<compile_context>
chip_gen: v7x
topology: tpu7x:2x2x1
jax: 0.10.0
libtpu: 0.0.40
codegen_flags: <defaults>
</compile_context>

<pallas_src>
import jax
import jax.numpy as jnp
from jax.experimental import pallas as pl
from jax.experimental.pallas import tpu as pltpu

# ----------------------------------------------------------------------------
# Model hyper-parameters (small, synthetic wav2vec2-like stack)
# ----------------------------------------------------------------------------
LABELS = ['<s>', '<pad>', '</s>', '<unk>', '|', 'E', 'T', 'A', 'O', 'N', 'I',
          'H', 'S', 'R', 'D', 'L', 'U', 'M', 'W', 'C', 'F', 'G', 'Y', 'P',
          'B', 'V', 'K', "'", 'X', 'J', 'Q', 'Z']

VOCAB = len(LABELS)          # 32  (true vocab)
VOCAB_PAD = 128              # lane-dense padded vocab for the kernel output
WIN = 64                     # conv window (receptive field) of feature extractor
WIN_PAD = 128                # lane-dense padded window (zero-padded)
STRIDE = 32                  # conv stride (WIN == 2 * STRIDE)
T = 64                       # number of output frames per utterance
HIDDEN = 128                 # encoder hidden size
BATCH = 4                    # utterances per pallas_call (M = BATCH*T = 256)
WAVE_LEN = (T - 1) * STRIDE + WIN   # = 2080 samples = (T + 1) * STRIDE
NEG_PAD = -1e9               # logit value for padded vocab columns


# ----------------------------------------------------------------------------
# Pallas kernel: frames -> padded logits [M,128] f32 + best-path ids [M,128] i32
# ----------------------------------------------------------------------------
def _w2v_kernel(frames_ref, wf_ref, bf_ref, w1_ref, b1_ref, w2_ref, b2_ref,
                logits_ref, best_ref):
    # Feature extractor: conv-as-matmul over framed waveform (bf16 in, f32 acc).
    x = frames_ref[...]                                            # [M, 128] bf16
    h = jnp.dot(x, wf_ref[...],
                preferred_element_type=jnp.float32) + bf_ref[...]  # [M, H] f32

    # Layer norm over feature dim, two-pass statistics (numerically safe).
    inv_h = jnp.float32(1.0 / HIDDEN)
    mu = jnp.sum(h, axis=-1, keepdims=True) * inv_h
    hc = h - mu
    var = jnp.sum(hc * hc, axis=-1, keepdims=True) * inv_h
    h = hc * jax.lax.rsqrt(var + 1e-5)

    # Encoder MLP block (GELU in f32; cast to bf16 only at matmul inputs).
    h = jax.nn.gelu(h)
    h2 = jnp.dot(h.astype(jnp.bfloat16), w1_ref[...],
                 preferred_element_type=jnp.float32) + b1_ref[...]  # [M, H]
    h2 = jax.nn.gelu(h2)

    # Vocab projection -> padded, lane-dense logits.  Padded bias columns are
    # -1e9, so padded lanes can never win the argmax below.
    logits = jnp.dot(h2.astype(jnp.bfloat16), w2_ref[...],
                     preferred_element_type=jnp.float32) + b2_ref[...]  # [M,128]
    logits_ref[...] = logits

    # In-kernel greedy argmax over the vocab lanes (first-max tie-break):
    # max-reduce, then min over the matching lane indices.  Broadcast across
    # lanes so the int32 output store is unmasked / lane-dense.
    col_ids = jax.lax.broadcasted_iota(jnp.int32, logits.shape, 1)
    max_val = jnp.max(logits, axis=-1, keepdims=True)
    cand = jnp.where(logits == max_val, col_ids, VOCAB_PAD)
    best = jnp.min(cand, axis=-1, keepdims=True)                    # [M, 1] i32
    best_ref[...] = jnp.broadcast_to(best, logits.shape).astype(jnp.int32)


def _build_w2v_call(batch):
    """Ungridded pallas_call: every operand a full VMEM-resident block."""
    m = batch * T
    vmem = pl.BlockSpec(memory_space=pltpu.MemorySpace.VMEM)

    flops = 2 * m * (WIN_PAD * HIDDEN + HIDDEN * HIDDEN + HIDDEN * VOCAB_PAD)
    transcendentals = 2 * m * HIDDEN + m          # two GELUs + rsqrt
    bytes_accessed = (m * WIN_PAD * 2                    # frames  bf16
                      + WIN_PAD * HIDDEN * 2 + HIDDEN * 4
                      + HIDDEN * HIDDEN * 2 + HIDDEN * 4
                      + HIDDEN * VOCAB_PAD * 2 + VOCAB_PAD * 4
                      + 2 * m * VOCAB_PAD * 4)           # logits + best ids

    return pl.pallas_call(
        _w2v_kernel,
        out_shape=(jax.ShapeDtypeStruct((m, VOCAB_PAD), jnp.float32),
                   jax.ShapeDtypeStruct((m, VOCAB_PAD), jnp.int32)),
        in_specs=[vmem] * 7,
        out_specs=(vmem, vmem),
        cost_estimate=pl.CostEstimate(
            flops=flops,
            transcendentals=transcendentals,
            bytes_accessed=bytes_accessed),
    )


# ----------------------------------------------------------------------------
# JAX glue: framing (one fused producer) + forward
# ----------------------------------------------------------------------------
def frame_waveforms(waveforms):
    """waveforms: [B, L] -> frames [B*T, WIN_PAD] bf16 (lane-dense, zero pad).

    WIN == 2*STRIDE, so every frame is two adjacent STRIDE blocks (no gather);
    slice + reshape + concat + pad + cast fuse into a single XLA producer."""
    b = waveforms.shape[0]
    wav = waveforms[:, :(T + 1) * STRIDE].astype(jnp.float32)
    blocks = wav.reshape(b, T + 1, STRIDE)
    frames = jnp.concatenate([blocks[:, :-1, :], blocks[:, 1:, :]], axis=2)
    frames = frames.reshape(b * T, WIN)
    frames = jnp.pad(frames, ((0, 0), (0, WIN_PAD - WIN)))
    return frames.astype(jnp.bfloat16)


@jax.jit
def _forward_device(waveforms, kparams):
    b = waveforms.shape[0]
    frames = frame_waveforms(waveforms)                       # [B*T, 128] bf16
    logits_pad, best_pad = _build_w2v_call(b)(frames, *kparams)
    logits = logits_pad[:, :VOCAB].reshape(b, T, VOCAB)       # true vocab
    best_path = best_pad[:, 0].reshape(b, T)                  # argmax indices
    return logits, best_path


def greedy_decode(best_path_row):
    # TODO(synk): string manipulation has no Pallas equivalent; done on host.
    prev = ''
    hypothesis = ''
    for i in best_path_row:
        char = LABELS[int(i)]
        if char == prev:
            continue
        if char == '<s>':
            prev = ''
            continue
        hypothesis += char
        prev = char
    return hypothesis.replace('|', ' ')


def speech_recognizer_forward(waveforms, kparams):
    """waveforms: [B, num_frames] -> (list of B transcripts, logits, best_path)."""
    logits, best_path = _forward_device(waveforms, kparams)
    jax.block_until_ready((logits, best_path))
    bp = jax.device_get(best_path)
    transcripts = [greedy_decode(row) for row in bp]
    return transcripts, logits, best_path


# ----------------------------------------------------------------------------
# Parameters
# ----------------------------------------------------------------------------
def init_params(key):
    """Model-space parameters (f32, true vocab / window widths)."""
    k = jax.random.split(key, 6)
    wf = jax.random.normal(k[0], (WIN, HIDDEN), jnp.float32) * 0.1
    bf = jax.random.normal(k[1], (1, HIDDEN), jnp.float32) * 0.01
    w1 = jax.random.normal(k[2], (HIDDEN, HIDDEN), jnp.float32) * 0.1
    b1 = jax.random.normal(k[3], (1, HIDDEN), jnp.float32) * 0.01
    w2 = jax.random.normal(k[4], (HIDDEN, VOCAB), jnp.float32) * 0.1
    b2 = jax.random.normal(k[5], (1, VOCAB), jnp.float32) * 0.01
    return (wf, bf, w1, b1, w2, b2)


def prepare_kernel_params(params):
    """Cast weights to bf16; zero-pad WIN 64->128 and vocab 32->128 (bias -1e9)."""
    wf, bf, w1, b1, w2, b2 = params
    wf_pad = jnp.zeros((WIN_PAD, HIDDEN), jnp.float32).at[:WIN, :].set(wf)
    w2_pad = jnp.zeros((HIDDEN, VOCAB_PAD), jnp.float32).at[:, :VOCAB].set(w2)
    b2_pad = jnp.full((1, VOCAB_PAD), NEG_PAD, jnp.float32).at[:, :VOCAB].set(b2)
    return (wf_pad.astype(jnp.bfloat16),
            bf.astype(jnp.float32),
            w1.astype(jnp.bfloat16),
            b1.astype(jnp.float32),
            w2_pad.astype(jnp.bfloat16),
            b2_pad.astype(jnp.float32))


if __name__ == "__main__":
    key = jax.random.PRNGKey(0)
    pkey, wkey = jax.random.split(key)
    params = init_params(pkey)
    kparams = prepare_kernel_params(params)
    waveforms = jax.random.normal(wkey, (BATCH, WAVE_LEN), jnp.float32)

    transcripts, logits, best_path = speech_recognizer_forward(waveforms, kparams)
    jax.block_until_ready((logits, best_path))

    assert logits.shape == (BATCH, T, VOCAB)
    assert best_path.shape == (BATCH, T)
    assert int(jnp.max(best_path)) < VOCAB        # padded columns never selected
    assert int(jnp.min(best_path)) >= 0
    assert len(transcripts) == BATCH
    assert all(isinstance(s, str) for s in transcripts)
    print("KERNEL_OK")
</pallas_src>

<mosaic_0001>
module attributes {stable_mosaic.version = 11 : i64} {
  func.func @_w2v_kernel(%arg0: memref<256x128xbf16, #tpu.memory_space<vmem>>, %arg1: memref<128x128xbf16, #tpu.memory_space<vmem>>, %arg2: memref<1x128xf32, #tpu.memory_space<vmem>>, %arg3: memref<128x128xbf16, #tpu.memory_space<vmem>>, %arg4: memref<1x128xf32, #tpu.memory_space<vmem>>, %arg5: memref<128x128xbf16, #tpu.memory_space<vmem>>, %arg6: memref<1x128xf32, #tpu.memory_space<vmem>>, %arg7: memref<256x128xf32, #tpu.memory_space<vmem>>, %arg8: memref<256x128xi32, #tpu.memory_space<vmem>>) attributes {dimension_semantics = [], scalar_prefetch = 0 : i64, scratch_operands = 0 : i64, tpu.core_type = #tpu.core_type<tc>} {
    %c0 = arith.constant 0 : index
    %c0_0 = arith.constant 0 : index
    %0 = vector.load %arg0[%c0, %c0_0] : memref<256x128xbf16, #tpu.memory_space<vmem>>, vector<256x128xbf16>
    %c0_1 = arith.constant 0 : index
    %c0_2 = arith.constant 0 : index
    %1 = vector.load %arg1[%c0_1, %c0_2] : memref<128x128xbf16, #tpu.memory_space<vmem>>, vector<128x128xbf16>
    %cst = arith.constant dense<0.000000e+00> : vector<256x128xf32>
    %2 = tpu.matmul %0, %1, %cst {dimension_numbers = #tpu.dot_dimension_numbers<[1], [0], [0], [1], [0, 0, 1, 1], [], []>} : vector<256x128xbf16>, vector<128x128xbf16>, vector<256x128xf32> -> vector<256x128xf32>
    %c0_3 = arith.constant 0 : index
    %c0_4 = arith.constant 0 : index
    %3 = vector.load %arg2[%c0_3, %c0_4] : memref<1x128xf32, #tpu.memory_space<vmem>>, vector<1x128xf32>
    %4 = vector.broadcast %3 : vector<1x128xf32> to vector<256x128xf32>
    %5 = arith.addf %2, %4 : vector<256x128xf32>
    %cst_5 = arith.constant dense<0.000000e+00> : vector<256xf32>
    %6 = vector.multi_reduction <add>, %5, %cst_5 [1] : vector<256x128xf32> to vector<256xf32>
    %7 = vector.shape_cast %6 : vector<256xf32> to vector<256x1xf32>
    %cst_6 = arith.constant 7.812500e-03 : f32
    %8 = vector.broadcast %cst_6 : f32 to vector<256x1xf32>
    %9 = arith.mulf %7, %8 : vector<256x1xf32>
    %10 = vector.broadcast %9 : vector<256x1xf32> to vector<256x128xf32>
    %11 = arith.subf %5, %10 : vector<256x128xf32>
    %12 = arith.mulf %11, %11 : vector<256x128xf32>
    %cst_7 = arith.constant dense<0.000000e+00> : vector<256xf32>
    %13 = vector.multi_reduction <add>, %12, %cst_7 [1] : vector<256x128xf32> to vector<256xf32>
    %14 = vector.shape_cast %13 : vector<256xf32> to vector<256x1xf32>
    %cst_8 = arith.constant 7.812500e-03 : f32
    %15 = vector.broadcast %cst_8 : f32 to vector<256x1xf32>
    %16 = arith.mulf %14, %15 : vector<256x1xf32>
    %cst_9 = arith.constant 9.99999974E-6 : f32
    %17 = vector.broadcast %cst_9 : f32 to vector<256x1xf32>
    %18 = arith.addf %16, %17 : vector<256x1xf32>
    %19 = math.rsqrt %18 : vector<256x1xf32>
    %20 = vector.broadcast %19 : vector<256x1xf32> to vector<256x128xf32>
    %21 = arith.mulf %11, %20 : vector<256x128xf32>
    %22 = arith.mulf %21, %21 : vector<256x128xf32>
    %23 = arith.mulf %21, %22 : vector<256x128xf32>
    %cst_10 = arith.constant 4.471500e-02 : f32
    %24 = vector.broadcast %cst_10 : f32 to vector<256x128xf32>
    %25 = arith.mulf %24, %23 : vector<256x128xf32>
    %26 = arith.addf %21, %25 : vector<256x128xf32>
    %cst_11 = arith.constant 0.797884583 : f32
    %27 = vector.broadcast %cst_11 : f32 to vector<256x128xf32>
    %28 = arith.mulf %27, %26 : vector<256x128xf32>
    %29 = math.tanh %28 : vector<256x128xf32>
    %cst_12 = arith.constant 1.000000e+00 : f32
    %30 = vector.broadcast %cst_12 : f32 to vector<256x128xf32>
    %31 = arith.addf %30, %29 : vector<256x128xf32>
    %cst_13 = arith.constant 5.000000e-01 : f32
    %32 = vector.broadcast %cst_13 : f32 to vector<256x128xf32>
    %33 = arith.mulf %32, %31 : vector<256x128xf32>
    %34 = arith.mulf %21, %33 : vector<256x128xf32>
    %35 = arith.truncf %34 : vector<256x128xf32> to vector<256x128xbf16>
    %c0_14 = arith.constant 0 : index
    %c0_15 = arith.constant 0 : index
    %36 = vector.load %arg3[%c0_14, %c0_15] : memref<128x128xbf16, #tpu.memory_space<vmem>>, vector<128x128xbf16>
    %cst_16 = arith.constant dense<0.000000e+00> : vector<256x128xf32>
    %37 = tpu.matmul %35, %36, %cst_16 {dimension_numbers = #tpu.dot_dimension_numbers<[1], [0], [0], [1], [0, 0, 1, 1], [], []>} : vector<256x128xbf16>, vector<128x128xbf16>, vector<256x128xf32> -> vector<256x128xf32>
    %c0_17 = arith.constant 0 : index
    %c0_18 = arith.constant 0 : index
    %38 = vector.load %arg4[%c0_17, %c0_18] : memref<1x128xf32, #tpu.memory_space<vmem>>, vector<1x128xf32>
    %39 = vector.broadcast %38 : vector<1x128xf32> to vector<256x128xf32>
    %40 = arith.addf %37, %39 : vector<256x128xf32>
    %41 = arith.mulf %40, %40 : vector<256x128xf32>
    %42 = arith.mulf %40, %41 : vector<256x128xf32>
    %cst_19 = arith.constant 4.471500e-02 : f32
    %43 = vector.broadcast %cst_19 : f32 to vector<256x128xf32>
    %44 = arith.mulf %43, %42 : vector<256x128xf32>
    %45 = arith.addf %40, %44 : vector<256x128xf32>
    %cst_20 = arith.constant 0.797884583 : f32
    %46 = vector.broadcast %cst_20 : f32 to vector<256x128xf32>
    %47 = arith.mulf %46, %45 : vector<256x128xf32>
    %48 = math.tanh %47 : vector<256x128xf32>
    %cst_21 = arith.constant 1.000000e+00 : f32
    %49 = vector.broadcast %cst_21 : f32 to vector<256x128xf32>
    %50 = arith.addf %49, %48 : vector<256x128xf32>
    %cst_22 = arith.constant 5.000000e-01 : f32
    %51 = vector.broadcast %cst_22 : f32 to vector<256x128xf32>
    %52 = arith.mulf %51, %50 : vector<256x128xf32>
    %53 = arith.mulf %40, %52 : vector<256x128xf32>
    %54 = arith.truncf %53 : vector<256x128xf32> to vector<256x128xbf16>
    %c0_23 = arith.constant 0 : index
    %c0_24 = arith.constant 0 : index
    %55 = vector.load %arg5[%c0_23, %c0_24] : memref<128x128xbf16, #tpu.memory_space<vmem>>, vector<128x128xbf16>
    %cst_25 = arith.constant dense<0.000000e+00> : vector<256x128xf32>
    %56 = tpu.matmul %54, %55, %cst_25 {dimension_numbers = #tpu.dot_dimension_numbers<[1], [0], [0], [1], [0, 0, 1, 1], [], []>} : vector<256x128xbf16>, vector<128x128xbf16>, vector<256x128xf32> -> vector<256x128xf32>
    %c0_26 = arith.constant 0 : index
    %c0_27 = arith.constant 0 : index
    %57 = vector.load %arg6[%c0_26, %c0_27] : memref<1x128xf32, #tpu.memory_space<vmem>>, vector<1x128xf32>
    %58 = vector.broadcast %57 : vector<1x128xf32> to vector<256x128xf32>
    %59 = arith.addf %56, %58 : vector<256x128xf32>
    %c0_28 = arith.constant 0 : index
    %c0_29 = arith.constant 0 : index
    %60 = vector.load %arg7[%c0_28, %c0_29] : memref<256x128xf32, #tpu.memory_space<vmem>>, vector<256x128xf32>
    tpu.vector_store %arg7[%c0_28, %c0_29], %59 {strides = array<i32>} : memref<256x128xf32, #tpu.memory_space<vmem>>, vector<256x128xf32>,
    %61 = tpu.iota {dimensions = array<i32: 1>} : vector<256x128xi32>
    %cst_30 = arith.constant dense<0xFF800000> : vector<256xf32>
    %62 = vector.multi_reduction <maximumf>, %59, %cst_30 [1] : vector<256x128xf32> to vector<256xf32>
    %63 = vector.shape_cast %62 : vector<256xf32> to vector<256x1xf32>
    %64 = vector.broadcast %63 : vector<256x1xf32> to vector<256x128xf32>
    %65 = arith.cmpf oeq, %59, %64 : vector<256x128xf32>
    %c128_i32 = arith.constant 128 : i32
    %66 = vector.broadcast %c128_i32 : i32 to vector<256x128xi32>
    %67 = arith.select %65, %61, %66 : vector<256x128xi1>, vector<256x128xi32>
    %cst_31 = arith.constant dense<2147483647> : vector<256xi32>
    %68 = vector.multi_reduction <minsi>, %67, %cst_31 [1] : vector<256x128xi32> to vector<256xi32>
    %69 = vector.shape_cast %68 : vector<256xi32> to vector<256x1xi32>
    %70 = vector.shape_cast %69 : vector<256x1xi32> to vector<256x1xi32>
    %71 = vector.broadcast %70 : vector<256x1xi32> to vector<256x128xi32>
    %c0_32 = arith.constant 0 : index
    %c0_33 = arith.constant 0 : index
    %72 = vector.load %arg8[%c0_32, %c0_33] : memref<256x128xi32, #tpu.memory_space<vmem>>, vector<256x128xi32>
    tpu.vector_store %arg8[%c0_32, %c0_33], %71 {strides = array<i32>} : memref<256x128xi32, #tpu.memory_space<vmem>>, vector<256x128xi32>,
    return
  }
}

</mosaic_0001>

<bundles_post_ra>
// kernel: squeeze.1
= control target key start
LH: loop header
LB: loop body
LE: loop exit
PB: predicated region body
PF: predicated region fallthrough
CT: control target
= control target key end

     0   :  { %s85_s0 = inlined_call_operand.vmem [shape: s32[256], index: 0, kind: input, shape index: {}]   ;;  %s86_s1 = inlined_call_operand.hbm [shape: s32[4,64], index: 1, kind: output, shape index: {}]  }
   0x1   :  { %v5_v0 = vld [vmem:[%s85_s0] sm:$0x3] }
   0x2   :  { %2 = vsyncpa [#allocation1], 0  ;;  %6 = vst [vmem:[#allocation3] sm:$0x3] %v5_v0  ;;  %vm8_vm0 = vcmask 523264   ;;  %s58_s0 = smov 64  }
   0x3   :  { %s59_s8 = smov [#allocation0]  }
   0x4   :  { %s26_s9 = sshll.u32 %s59_s8, 4  ;;  %s27_s9 = int_to_ptr.vmem [resolvable:$true] %s26_s9 }
   0x5   :  { %s34_s10 = scalar_lea.vmem %s27_s9, 64  ;;  %p39_p1 = scmp.lt.s32.totalorder %s27_s9, %s27_s9 }
   0x6   :  { %p35_p0 = scmp.ne.s32.totalorder %s27_s9, %s34_s10  ;;  %p40_p2 = scmp.lt.s32.totalorder %s34_s10, %s34_s10 }
   0x8   :  { %p41_p3 = por %p40_p2, %p39_p1 }
   0x9   :  { %v10_v1 = vld [vmem:[#allocation3] sm:$0x3]  }
   0xa   :  { %v7_v2 = vld [vmem:[#allocation3] sm:$0x3]   ;;  %11 = vrot.lane.b32.xlu0 %v10_v1, %s58_s0  ;;  %p42_p4 = pnand %p41_p3, %p35_p0 }
   0xb   :  { %9 = vst.msk [vmem:[#allocation2] ss:$2 sm:$0x3] %vm8_vm0, %v7_v2  }
  0x7c   :  { %v12_v3 = vpop.permute.xlu0 %11  }
  0x7d   :  { %15 = vst.msk [vmem:[#allocation2 + $0x1] ss:$2 sm:$0x3] %vm8_vm0, %v12_v3  }
  0x84   :  { %v19_v4 = vld [vmem:[#allocation2] sm:$0xf] }
  0x85   :  { %21 = vst [vmem:[#allocation0] sm:$0xf] %v19_v4 }
  0x86   :  { %45 = shalt.err (!%p42_p4)
}
  0x87   :  { %s46_s13 = scalar_lea.hbm %s86_s1, 64 }
  0x88   :  { %p47_p5 = scmp.ne.s32.totalorder %s86_s1, %s46_s13  ;;  %p50_p6 = scmp.lt.u32.totalorder %s46_s13, %s86_s1 }
  0x8a   :  { %p52_p7 = pnand %p50_p6, %p47_p5 }
  0x8c   :  { %55 = shalt.err (!%p52_p7)
}
  0x8d   :  { %29 = dma.vmem_to_hbm [thread:$0]  %s27_s9, 64, %s86_s1, [#allocation1]  }
  0x8e   :  { %56 = dma.done.wait [#allocation1], 64  }
  0x8f   :  { %57 = vsyncadd [#allocation1], 4294967232 }
  0x90   :  { %31 = vsyncpa [#allocation1], 1 }

// kernel: _forward_device.1
= control target key start
LH: loop header
LB: loop body
LE: loop exit
PB: predicated region body
PF: predicated region fallthrough
CT: control target
= control target key end

     0   :  { %s4764_s1 = inlined_call_operand.vmem [shape: bf16[128,128], index: 1, kind: input, shape index: {}]   ;;  %s4765_s0 = inlined_call_operand.vmem [shape: bf16[256,128], index: 0, kind: input, shape index: {}]   ;;  %s4766_s2 = inlined_call_operand.vmem [shape: f32[1,128], index: 2, kind: input, shape index: {}]   ;;  %s4767_s3 = inlined_call_operand.vmem [shape: bf16[128,128], index: 3, kind: input, shape index: {}]   ;;  %s4768_s5 = inlined_call_operand.vmem [shape: bf16[128,128], index: 5, kind: input, shape index: {}]   ;;  %s4769_s4 = inlined_call_operand.vmem [shape: f32[1,128], index: 4, kind: input, shape index: {}]   ;;  %s4770_s6 = inlined_call_operand.vmem [shape: f32[1,128], index: 6, kind: input, shape index: {}]   ;;  %s4771_s7 = inlined_call_operand.vmem [shape: f32[256,128], index: 7, kind: output, shape index: {0}]   ;;  %s4772_s8 = inlined_call_operand.vmem [shape: s32[256,128], index: 8, kind: output, shape index: {1}]  }
   0x1   :  { %v2738_v0 = vld [vmem:[%s4764_s1] sm:$0xff]   ;;  %v2739_v1 = vld [vmem:[%s4764_s1 + $0x8] sm:$0xff]   ;;  %v2740_v2 = vld [vmem:[%s4764_s1 + $0x10] sm:$0xff]  }
   0x2   :  { %2578 = vmatprep.subr.bf16.mxu0 %v2738_v0  ;;  %2722 = vmatprep.subr.bf16.mxu1 %v2738_v0  ;;  %v2741_v3 = vld [vmem:[%s4764_s1 + $0x18] sm:$0xff]   ;;  %v2746_v4 = vld [vmem:[%s4765_s0] sm:$0xff]   ;;  %v2743_v6 = vld [vmem:[%s4764_s1 + $0x28] sm:$0xff]  }
   0x3   :  { %2579 = vmatpush3.bf16.msra.mxu0 %v2738_v0  ;;  %2730 = vmatpush3.bf16.msra.mxu1 %v2738_v0  ;;  %v2742_v5 = vld [vmem:[%s4764_s1 + $0x20] sm:$0xff]   ;;  %v2744_v8 = vld [vmem:[%s4764_s1 + $0x30] sm:$0xff]   ;;  %v2745_v9 = vld [vmem:[%s4764_s1 + $0x38] sm:$0xff]  }
   0x4   :  { %2580 = vmatprep.subr.bf16.mxu0 %v2739_v1  ;;  %2723 = vmatprep.subr.bf16.mxu1 %v2739_v1  ;;  %v2754_v7 = vld [vmem:[%s4765_s0 + $0x40] sm:$0xff]   ;;  %v2747_v10 = vld [vmem:[%s4765_s0 + $0x8] sm:$0xff]   ;;  %v2748_v12 = vld [vmem:[%s4765_s0 + $0x10] sm:$0xff]  }
   0x5   :  { %2594 = vmatprep.mubr.bf16.mxu0 %v2746_v4  ;;  %2610 = vmatprep.mubr.bf16.mxu1 %v2754_v7  ;;  %v2755_v11 = vld [vmem:[%s4765_s0 + $0x48] sm:$0xff]   ;;  %v2756_v13 = vld [vmem:[%s4765_s0 + $0x50] sm:$0xff]   ;;  %v2749_v14 = vld [vmem:[%s4765_s0 + $0x18] sm:$0xff]  }
   0x6   :  { %v2757_v15 = vld [vmem:[%s4765_s0 + $0x58] sm:$0xff]   ;;  %v2750_v16 = vld [vmem:[%s4765_s0 + $0x20] sm:$0xff]   ;;  %v2751_v18 = vld [vmem:[%s4765_s0 + $0x28] sm:$0xff]  }
   0x7   :  { %2581 = vmatpush3.bf16.msra.mxu0 %v2739_v1  ;;  %2731 = vmatpush3.bf16.msra.mxu1 %v2739_v1  ;;  %v2758_v17 = vld [vmem:[%s4765_s0 + $0x60] sm:$0xff]   ;;  %v2759_v19 = vld [vmem:[%s4765_s0 + $0x68] sm:$0xff]   ;;  %v2752_v20 = vld [vmem:[%s4765_s0 + $0x30] sm:$0xff]  }
   0x8   :  { %2582 = vmatprep.subr.bf16.mxu0 %v2740_v2  ;;  %2724 = vmatprep.subr.bf16.mxu1 %v2740_v2  ;;  %v2760_v21 = vld [vmem:[%s4765_s0 + $0x70] sm:$0xff]   ;;  %v2753_v22 = vld [vmem:[%s4765_s0 + $0x38] sm:$0xff]   ;;  %v3090_v24 = vld [vmem:[%s4766_s2] ss:$0 sm:$0xff] }
   0x9   :  { %v2761_v23 = vld [vmem:[%s4765_s0 + $0x78] sm:$0xff]  }
   0xb   :  { %2583 = vmatpush3.bf16.msra.mxu0 %v2740_v2  ;;  %2732 = vmatpush3.bf16.msra.mxu1 %v2740_v2 }
   0xc   :  { %2584 = vmatprep.subr.bf16.mxu0 %v2741_v3  ;;  %2725 = vmatprep.subr.bf16.mxu1 %v2741_v3 }
   0xf   :  { %2585 = vmatpush3.bf16.msra.mxu0 %v2741_v3  ;;  %2733 = vmatpush3.bf16.msra.mxu1 %v2741_v3 }
  0x10   :  { %2586 = vmatprep.subr.bf16.mxu0 %v2742_v5  ;;  %2726 = vmatprep.subr.bf16.mxu1 %v2742_v5 }
  0x13   :  { %2587 = vmatpush3.bf16.msra.mxu0 %v2742_v5  ;;  %2734 = vmatpush3.bf16.msra.mxu1 %v2742_v5 }
  0x14   :  { %2588 = vmatprep.subr.bf16.mxu0 %v2743_v6  ;;  %2727 = vmatprep.subr.bf16.mxu1 %v2743_v6 }
  0x17   :  { %2589 = vmatpush3.bf16.msra.mxu0 %v2743_v6  ;;  %2735 = vmatpush3.bf16.msra.mxu1 %v2743_v6 }
  0x18   :  { %2590 = vmatprep.subr.bf16.mxu0 %v2744_v8  ;;  %2728 = vmatprep.subr.bf16.mxu1 %v2744_v8 }
  0x1b   :  { %2591 = vmatpush3.bf16.msra.mxu0 %v2744_v8  ;;  %2736 = vmatpush3.bf16.msra.mxu1 %v2744_v8 }
  0x1c   :  { %2592 = vmatprep.subr.bf16.mxu0 %v2745_v9  ;;  %2729 = vmatprep.subr.bf16.mxu1 %v2745_v9 }
  0x1f   :  { %2593 = vmatpush3.bf16.msra.mxu0 %v2745_v9  ;;  %2737 = vmatpush3.bf16.msra.mxu1 %v2745_v9 }
  0x22   :  { %2595 = vmatmul.mubr.bf16.vlgmr.msra.gmra.mrb[0].mxu0 %v2747_v10  ;;  %2611 = vmatmul.mubr.bf16.vlgmr.msra.gmra.mrb[0].mxu1 %v2755_v11 }
  0x23   :  { %2598 = vmatprep.mubr.bf16.mxu0 %v2748_v12  ;;  %2614 = vmatprep.mubr.bf16.mxu1 %v2756_v13 }
  0x2a   :  { %2599 = vmatmul.mubr.bf16.gmra.mrb[4].mxu0 %v2749_v14  ;;  %2615 = vmatmul.mubr.bf16.gmra.mrb[4].mxu1 %v2757_v15 }
  0x2b   :  { %2602 = vmatprep.mubr.bf16.mxu0 %v2750_v16  ;;  %2618 = vmatprep.mubr.bf16.mxu1 %v2758_v17 }
  0x32   :  { %2603 = vmatmul.mubr.bf16.gmra.mrb[8].mxu0 %v2751_v18  ;;  %2619 = vmatmul.mubr.bf16.gmra.mrb[8].mxu1 %v2759_v19 }
  0x33   :  { %2606 = vmatprep.mubr.bf16.mxu0 %v2752_v20  ;;  %2622 = vmatprep.mubr.bf16.mxu1 %v2760_v21 }
  0x3a   :  { %2607 = vmatmul.mubr.bf16.gmra.mrb[12].mxu0 %v2753_v22  ;;  %2623 = vmatmul.mubr.bf16.gmra.mrb[12].mxu1 %v2761_v23 }
  0xf5   :  { %v2596_v25 = vpop.f32.mrb[0].mxu0  ;;  %v3092_v26 = vpop.f32.mrb[0].mxu1 }
  0xf6   :  { %v3095_v27 = vadd.f32 %v2596_v25, %v3090_v24  ;;  %v262_v28 = vpop.f32.mrb[1].mxu0  ;;  %v326_v29 = vpop.f32.mrb[1].mxu1  ;;  %v3167_v11 = vadd.f32 %v3092_v26, %v3090_v24 }
  0xf7   :  { %v3098_v30 = vadd.f32 %v3090_v24, %v262_v28  ;;  %v2597_v31 = vpop.f32.mrb[2].mxu0  ;;  %v2613_v32 = vpop.f32.mrb[2].mxu1  ;;  %v3157_v9 = vadd.f32 %v3090_v24, %v326_v29 }
  0xf8   :  { %393 = vadd.xlane.f32.xlu1 %v3095_v27  ;;  %v265_v33 = vpop.f32.mrb[3].mxu0  ;;  %v329_v34 = vpop.f32.mrb[3].mxu1  ;;  %v3103_v35 = vadd.f32 %v2597_v31, %v3090_v24  ;;  %v3171_v12 = vadd.f32 %v2613_v32, %v3090_v24 }
  0xf9   :  { %389 = vadd.xlane.f32.xlu0 %v3098_v30  ;;  %v3106_v36 = vadd.f32 %v3090_v24, %v265_v33  ;;  %v3161_v10 = vadd.f32 %v3090_v24, %v329_v34 }
  0xfc   :  { %395 = vadd.xlane.f32.xlu1 %v3103_v35 }
  0xfd   :  { %v2600_v37 = vpop.f32.mrb[4].mxu0  ;;  %391 = vadd.xlane.f32.xlu0 %v3106_v36  ;;  %v2616_v38 = vpop.f32.mrb[4].mxu1 }
  0xfe   :  { %v278_v39 = vpop.f32.mrb[5].mxu0  ;;  %v342_v40 = vpop.f32.mrb[5].mxu1  ;;  %v3118_v47 = vadd.f32 %v2600_v37, %v3090_v24  ;;  %v3183_v15 = vadd.f32 %v2616_v38, %v3090_v24 }
  0xff   :  { %v3111_v41 = vadd.f32 %v3090_v24, %v278_v39  ;;  %v2601_v42 = vpop.f32.mrb[6].mxu0  ;;  %v2617_v43 = vpop.f32.mrb[6].mxu1  ;;  %v3174_v13 = vadd.f32 %v3090_v24, %v342_v40 }
 0x100   :  { %v281_v44 = vpop.f32.mrb[7].mxu0  ;;  %v345_v45 = vpop.f32.mrb[7].mxu1  ;;  %v3122_v48 = vadd.f32 %v2601_v42, %v3090_v24  ;;  %v3187_v16 = vadd.f32 %v2617_v43, %v3090_v24 }
 0x101   :  { %v3114_v46 = vadd.f32 %v3090_v24, %v281_v44  ;;  %397 = vadd.xlane.f32.xlu0 %v3111_v41  ;;  %v3178_v14 = vadd.f32 %v3090_v24, %v345_v45 }
 0x103   :  { %399 = vadd.xlane.f32.xlu1 %v3114_v46 }
 0x105   :  { %v2604_v49 = vpop.f32.mrb[8].mxu0  ;;  %401 = vadd.xlane.f32.xlu0 %v3118_v47  ;;  %v2620_v50 = vpop.f32.mrb[8].mxu1 }
 0x106   :  { %v294_v51 = vpop.f32.mrb[9].mxu0  ;;  %v358_v52 = vpop.f32.mrb[9].mxu1  ;;  %v3134_v59 = vadd.f32 %v2604_v49, %v3090_v24  ;;  %v3199_v19 = vadd.f32 %v2620_v50, %v3090_v24 }
 0x107   :  { %v3126_v53 = vadd.f32 %v3090_v24, %v294_v51  ;;  %v2605_v54 = vpop.f32.mrb[10].mxu0  ;;  %403 = vadd.xlane.f32.xlu1 %v3122_v48  ;;  %v2621_v55 = vpop.f32.mrb[10].mxu1  ;;  %v3190_v17 = vadd.f32 %v3090_v24, %v358_v52 }
 0x108   :  { %v297_v56 = vpop.f32.mrb[11].mxu0  ;;  %v361_v57 = vpop.f32.mrb[11].mxu1  ;;  %v3138_v60 = vadd.f32 %v2605_v54, %v3090_v24  ;;  %v3203_v20 = vadd.f32 %v2621_v55, %v3090_v24 }
 0x109   :  { %v3130_v58 = vadd.f32 %v3090_v24, %v297_v56  ;;  %405 = vadd.xlane.f32.xlu0 %v3126_v53  ;;  %v3194_v18 = vadd.f32 %v3090_v24, %v361_v57 }
 0x10b   :  { %407 = vadd.xlane.f32.xlu1 %v3130_v58 }
 0x10d   :  { %v2608_v61 = vpop.f32.mrb[12].mxu0  ;;  %409 = vadd.xlane.f32.xlu0 %v3134_v59  ;;  %v2624_v62 = vpop.f32.mrb[12].mxu1 }
 0x10e   :  { %v310_v63 = vpop.f32.mrb[13].mxu0  ;;  %v374_v0 = vpop.f32.mrb[13].mxu1  ;;  %v3150_v7 = vadd.f32 %v2608_v61, %v3090_v24  ;;  %v3215_v23 = vadd.f32 %v2624_v62, %v3090_v24 }
 0x10f   :  { %v3142_v1 = vadd.f32 %v3090_v24, %v310_v63  ;;  %v2609_v2 = vpop.f32.mrb[14].mxu0  ;;  %411 = vadd.xlane.f32.xlu1 %v3138_v60  ;;  %v2625_v3 = vpop.f32.mrb[14].mxu1  ;;  %v3206_v21 = vadd.f32 %v3090_v24, %v374_v0 }
 0x110   :  { %v313_v4 = vpop.f32.mrb[15].mxu0  ;;  %v377_v5 = vpop.f32.mrb[15].mxu1  ;;  %v3154_v8 = vadd.f32 %v2609_v2, %v3090_v24  ;;  %v3219_v25 = vadd.f32 %v2625_v3, %v3090_v24 }
 0x111   :  { %v3146_v6 = vadd.f32 %v3090_v24, %v313_v4  ;;  %413 = vadd.xlane.f32.xlu0 %v3142_v1  ;;  %v3210_v22 = vadd.f32 %v3090_v24, %v377_v5 }
 0x113   :  { %415 = vadd.xlane.f32.xlu1 %v3146_v6 }
 0x115   :  { %417 = vadd.xlane.f32.xlu0 %v3150_v7 }
 0x117   :  { %419 = vadd.xlane.f32.xlu1 %v3154_v8 }
 0x119   :  { %421 = vadd.xlane.f32.xlu0 %v3157_v9 }
 0x11b   :  { %423 = vadd.xlane.f32.xlu1 %v3161_v10 }
 0x11d   :  { %425 = vadd.xlane.f32.xlu0 %v3167_v11 }
 0x11f   :  { %427 = vadd.xlane.f32.xlu1 %v3171_v12 }
 0x121   :  { %429 = vadd.xlane.f32.xlu0 %v3174_v13 }
 0x123   :  { %431 = vadd.xlane.f32.xlu1 %v3178_v14 }
 0x125   :  { %433 = vadd.xlane.f32.xlu0 %v3183_v15 }
 0x127   :  { %435 = vadd.xlane.f32.xlu1 %v3187_v16 }
 0x129   :  { %437 = vadd.xlane.f32.xlu0 %v3190_v17 }
 0x12b   :  { %439 = vadd.xlane.f32.xlu1 %v3194_v18 }
 0x12d   :  { %441 = vadd.xlane.f32.xlu0 %v3199_v19 }
 0x12f   :  { %443 = vadd.xlane.f32.xlu1 %v3203_v20 }
 0x131   :  { %445 = vadd.xlane.f32.xlu0 %v3206_v21 }
 0x133   :  { %447 = vadd.xlane.f32.xlu1 %v3210_v22 }
 0x135   :  { %449 = vadd.xlane.f32.xlu0 %v3215_v23 }
 0x137   :  { %451 = vadd.xlane.f32.xlu1 %v3219_v25 }
 0x185   :  { %v394_v26 = vpop.xlane.xlu1 %393 }
 0x186   :  { %v390_v28 = vpop.xlane.xlu0 %389  ;;  %v455_v29 = vmul.f32 0.0078125, %v394_v26 }
 0x187   :  { %v453_v31 = vmul.f32 0.0078125, %v390_v28 }
 0x188   :  { %v3229_v24 = vsub.f32 %v3095_v27, %v455_v29 }
 0x189   :  { %v396_v32 = vpop.xlane.xlu1 %395  ;;  %v3224_v33 = vsub.f32 %v3098_v30, %v453_v31 }
 0x18a   :  { %v392_v34 = vpop.xlane.xlu0 %391  ;;  %v456_v37 = vmul.f32 0.0078125, %v396_v32  ;;  %v519_v44 = vmul.f32 %v3229_v24, %v3229_v24 }
 0x18b   :  { %v454_v38 = vmul.f32 0.0078125, %v392_v34  ;;  %v517_v39 = vmul.f32 %v3224_v33, %v3224_v33 }
 0x18c   :  { %v3239_v45 = vsub.f32 %v3103_v35, %v456_v37 }
 0x18d   :  { %549 = vadd.xlane.f32.xlu0 %v517_v39  ;;  %v3232_v40 = vsub.f32 %v3106_v36, %v454_v38 }
 0x18e   :  { %v398_v42 = vpop.xlane.xlu0 %397  ;;  %v520_v52 = vmul.f32 %v3239_v45, %v3239_v45 }
 0x18f   :  { %v457_v43 = vmul.f32 0.0078125, %v398_v42  ;;  %v518_v30 = vmul.f32 %v3232_v40, %v3232_v40 }
 0x190   :  { %v400_v49 = vpop.xlane.xlu1 %399 }
 0x191   :  { %v458_v50 = vmul.f32 0.0078125, %v400_v49  ;;  %553 = vadd.xlane.f32.xlu0 %v519_v44  ;;  %551 = vadd.xlane.f32.xlu1 %v518_v30  ;;  %v3242_v27 = vsub.f32 %v3111_v41, %v457_v43 }
 0x192   :  { %v402_v36 = vpop.xlane.xlu0 %401 }
 0x193   :  { %v459_v51 = vmul.f32 0.0078125, %v402_v36  ;;  %v521_v54 = vmul.f32 %v3242_v27, %v3242_v27  ;;  %v3249_v55 = vsub.f32 %v3114_v46, %v458_v50 }
 0x194   :  { %v404_v35 = vpop.xlane.xlu1 %403 }
 0x195   :  { %v460_v56 = vmul.f32 0.0078125, %v404_v35  ;;  %555 = vadd.xlane.f32.xlu1 %v520_v52  ;;  %557 = vadd.xlane.f32.xlu0 %v521_v54  ;;  %v3252_v57 = vsub.f32 %v3118_v47, %v459_v51  ;;  %v522_v62 = vmul.f32 %v3249_v55, %v3249_v55 }
 0x196   :  { %v406_v41 = vpop.xlane.xlu0 %405 }
 0x197   :  { %v461_v61 = vmul.f32 0.0078125, %v406_v41  ;;  %v523_v63 = vmul.f32 %v3252_v57, %v3252_v57  ;;  %v3259_v0 = vsub.f32 %v3122_v48, %v460_v56 }
 0x198   :  { %v408_v46 = vpop.xlane.xlu1 %407 }
 0x199   :  { %v462_v2 = vmul.f32 0.0078125, %v408_v46  ;;  %559 = vadd.xlane.f32.xlu1 %v522_v62  ;;  %561 = vadd.xlane.f32.xlu0 %v523_v63  ;;  %v3262_v3 = vsub.f32 %v3126_v53, %v461_v61  ;;  %v524_v5 = vmul.f32 %v3259_v0, %v3259_v0 }
 0x19a   :  { %v410_v47 = vpop.xlane.xlu0 %409 }
 0x19b   :  { %v463_v4 = vmul.f32 0.0078125, %v410_v47  ;;  %v525_v26 = vmul.f32 %v3262_v3, %v3262_v3  ;;  %v3269_v28 = vsub.f32 %v3130_v58, %v462_v2 }
 0x19c   :  { %v412_v48 = vpop.xlane.xlu1 %411 }
 0x19d   :  { %v464_v29 = vmul.f32 0.0078125, %v412_v48  ;;  %563 = vadd.xlane.f32.xlu1 %v524_v5  ;;  %565 = vadd.xlane.f32.xlu0 %v525_v26  ;;  %v3272_v31 = vsub.f32 %v3134_v59, %v463_v4  ;;  %v526_v34 = vmul.f32 %v3269_v28, %v3269_v28 }
 0x19e   :  { %v414_v53 = vpop.xlane.xlu0 %413 }
 0x19f   :  { %v465_v32 = vmul.f32 0.0078125, %v414_v53  ;;  %v527_v37 = vmul.f32 %v3272_v31, %v3272_v31  ;;  %v3279_v38 = vsub.f32 %v3138_v60, %v464_v29  ;;  %v2762_v29 = vld [vmem:[%s4767_s3] sm:$0xff]  }
 0x1a0   :  { %v416_v58 = vpop.xlane.xlu1 %415  ;;  %2626 = vmatprep.subr.bf16.mxu1 %v2762_v29 }
 0x1a1   :  { %v466_v39 = vmul.f32 0.0078125, %v416_v58  ;;  %567 = vadd.xlane.f32.xlu1 %v526_v34  ;;  %569 = vadd.xlane.f32.xlu0 %v527_v37  ;;  %v3282_v42 = vsub.f32 %v3142_v1, %v465_v32  ;;  %v528_v44 = vmul.f32 %v3279_v38, %v3279_v38 }
 0x1a2   :  { %v418_v59 = vpop.xlane.xlu0 %417  ;;  %2627 = vmatpush3.bf16.msra.mxu1 %v2762_v29 }
 0x1a3   :  { %v467_v43 = vmul.f32 0.0078125, %v418_v59  ;;  %v529_v30 = vmul.f32 %v3282_v42, %v3282_v42  ;;  %v3289_v49 = vsub.f32 %v3146_v6, %v466_v39  ;;  %v2763_v59 = vld [vmem:[%s4767_s3 + $0x8] sm:$0xff]  }
 0x1a4   :  { %v420_v60 = vpop.xlane.xlu1 %419  ;;  %2628 = vmatprep.subr.bf16.mxu1 %v2763_v59 }
 0x1a5   :  { %v468_v50 = vmul.f32 0.0078125, %v420_v60  ;;  %571 = vadd.xlane.f32.xlu1 %v528_v44  ;;  %573 = vadd.xlane.f32.xlu0 %v529_v30  ;;  %v3292_v36 = vsub.f32 %v3150_v7, %v467_v43  ;;  %v530_v52 = vmul.f32 %v3289_v49, %v3289_v49 }
 0x1a6   :  { %v422_v1 = vpop.xlane.xlu0 %421  ;;  %2629 = vmatpush3.bf16.msra.mxu1 %v2763_v59 }
 0x1a7   :  { %v469_v51 = vmul.f32 0.0078125, %v422_v1  ;;  %v531_v54 = vmul.f32 %v3292_v36, %v3292_v36  ;;  %v3299_v35 = vsub.f32 %v3154_v8, %v468_v50 }
 0x1a8   :  { %v424_v6 = vpop.xlane.xlu1 %423 }
 0x1a9   :  { %v470_v56 = vmul.f32 0.0078125, %v424_v6  ;;  %575 = vadd.xlane.f32.xlu1 %v530_v52  ;;  %577 = vadd.xlane.f32.xlu0 %v531_v54  ;;  %v3302_v41 = vsub.f32 %v3157_v9, %v469_v51  ;;  %v532_v62 = vmul.f32 %v3299_v35, %v3299_v35  ;;  %v2764_v51 = vld [vmem:[%s4767_s3 + $0x10] sm:$0xff]  }
 0x1aa   :  { %v426_v7 = vpop.xlane.xlu0 %425  ;;  %2630 = vmatprep.subr.bf16.mxu1 %v2764_v51 }
 0x1ab   :  { %v471_v61 = vmul.f32 0.0078125, %v426_v7  ;;  %v533_v63 = vmul.f32 %v3302_v41, %v3302_v41  ;;  %v3309_v46 = vsub.f32 %v3161_v10, %v470_v56  ;;  %2631 = vmatpush3.bf16.msra.mxu1 %v2764_v51 }
 0x1ac   :  { %v428_v8 = vpop.xlane.xlu1 %427 }
 0x1ad   :  { %v472_v2 = vmul.f32 0.0078125, %v428_v8  ;;  %579 = vadd.xlane.f32.xlu1 %v532_v62  ;;  %581 = vadd.xlane.f32.xlu0 %v533_v63  ;;  %v3312_v47 = vsub.f32 %v3167_v11, %v471_v61  ;;  %v534_v5 = vmul.f32 %v3309_v46, %v3309_v46  ;;  %v2765_v62 = vld [vmem:[%s4767_s3 + $0x18] sm:$0xff]  }
 0x1ae   :  { %v430_v9 = vpop.xlane.xlu0 %429  ;;  %2632 = vmatprep.subr.bf16.mxu1 %v2765_v62 }
 0x1af   :  { %v473_v4 = vmul.f32 0.0078125, %v430_v9  ;;  %v535_v26 = vmul.f32 %v3312_v47, %v3312_v47  ;;  %v3319_v48 = vsub.f32 %v3171_v12, %v472_v2  ;;  %2633 = vmatpush3.bf16.msra.mxu1 %v2765_v62 }
 0x1b0   :  { %v432_v10 = vpop.xlane.xlu1 %431 }
 0x1b1   :  { %v474_v53 = vmul.f32 0.0078125, %v432_v10  ;;  %583 = vadd.xlane.f32.xlu1 %v534_v5  ;;  %585 = vadd.xlane.f32.xlu0 %v535_v26  ;;  %v3325_v11 = vsub.f32 %v3174_v13, %v473_v4  ;;  %v536_v37 = vmul.f32 %v3319_v48, %v3319_v48  ;;  %v2766_v26 = vld [vmem:[%s4767_s3 + $0x20] sm:$0xff]  }
 0x1b2   :  { %v434_v32 = vpop.xlane.xlu0 %433  ;;  %2634 = vmatprep.subr.bf16.mxu1 %v2766_v26 }
 0x1b3   :  { %v475_v34 = vmul.f32 0.0078125, %v434_v32  ;;  %v537_v12 = vmul.f32 %v3325_v11, %v3325_v11  ;;  %v3332_v58 = vsub.f32 %v3178_v14, %v474_v53  ;;  %2635 = vmatpush3.bf16.msra.mxu1 %v2766_v26 }
 0x1b4   :  { %v436_v39 = vpop.xlane.xlu1 %435 }
 0x1b5   :  { %v476_v13 = vmul.f32 0.0078125, %v436_v39  ;;  %587 = vadd.xlane.f32.xlu1 %v536_v37  ;;  %589 = vadd.xlane.f32.xlu0 %v537_v12  ;;  %v3338_v43 = vsub.f32 %v3183_v15, %v475_v34  ;;  %v538_v60 = vmul.f32 %v3332_v58, %v3332_v58  ;;  %v2767_v12 = vld [vmem:[%s4767_s3 + $0x28] sm:$0xff]  }
 0x1b6   :  { %v438_v44 = vpop.xlane.xlu0 %437  ;;  %2636 = vmatprep.subr.bf16.mxu1 %v2767_v12 }
 0x1b7   :  { %v477_v30 = vmul.f32 0.0078125, %v438_v44  ;;  %v539_v14 = vmul.f32 %v3338_v43, %v3338_v43  ;;  %v3345_v50 = vsub.f32 %v3187_v16, %v476_v13  ;;  %2637 = vmatpush3.bf16.msra.mxu1 %v2767_v12  ;;  %v2768_v44 = vld [vmem:[%s4767_s3 + $0x30] sm:$0xff]  }
 0x1b8   :  { %v440_v1 = vpop.xlane.xlu1 %439  ;;  %2638 = vmatprep.subr.bf16.mxu1 %v2768_v44 }
 0x1b9   :  { %v478_v15 = vmul.f32 0.0078125, %v440_v1  ;;  %591 = vadd.xlane.f32.xlu1 %v538_v60  ;;  %593 = vadd.xlane.f32.xlu0 %v539_v14  ;;  %v3351_v52 = vsub.f32 %v3190_v17, %v477_v30  ;;  %v540_v56 = vmul.f32 %v3345_v50, %v3345_v50  ;;  %v2769_v30 = vld [vmem:[%s4767_s3 + $0x38] sm:$0xff]  }
 0x1ba   :  { %v442_v54 = vpop.xlane.xlu0 %441 }
 0x1bb   :  { %v479_v6 = vmul.f32 0.0078125, %v442_v54  ;;  %v541_v16 = vmul.f32 %v3351_v52, %v3351_v52  ;;  %v3358_v7 = vsub.f32 %v3194_v18, %v478_v15  ;;  %2639 = vmatpush3.bf16.msra.mxu1 %v2768_v44 }
 0x1bc   :  { %v444_v61 = vpop.xlane.xlu1 %443  ;;  %2640 = vmatprep.subr.bf16.mxu1 %v2769_v30 }
 0x1bd   :  { %v480_v17 = vmul.f32 0.0078125, %v444_v61  ;;  %595 = vadd.xlane.f32.xlu1 %v540_v56  ;;  %597 = vadd.xlane.f32.xlu0 %v541_v16  ;;  %v3364_v63 = vsub.f32 %v3199_v19, %v479_v6  ;;  %v542_v9 = vmul.f32 %v3358_v7, %v3358_v7 }
 0x1be   :  { %v446_v8 = vpop.xlane.xlu0 %445 }
 0x1bf   :  { %v481_v2 = vmul.f32 0.0078125, %v446_v8  ;;  %v543_v18 = vmul.f32 %v3364_v63, %v3364_v63  ;;  %v3371_v4 = vsub.f32 %v3203_v20, %v480_v17  ;;  %2641 = vmatpush3.bf16.msra.mxu1 %v2769_v30 }
 0x1c0   :  { %v448_v5 = vpop.xlane.xlu1 %447 }
 0x1c1   :  { %v482_v19 = vmul.f32 0.0078125, %v448_v5  ;;  %599 = vadd.xlane.f32.xlu1 %v542_v9  ;;  %601 = vadd.xlane.f32.xlu0 %v543_v18  ;;  %v3377_v10 = vsub.f32 %v3206_v21, %v481_v2  ;;  %v544_v32 = vmul.f32 %v3371_v4, %v3371_v4 }
 0x1c2   :  { %v450_v29 = vpop.xlane.xlu0 %449 }
 0x1c3   :  { %v483_v53 = vmul.f32 0.0078125, %v450_v29  ;;  %v545_v20 = vmul.f32 %v3377_v10, %v3377_v10  ;;  %v3384_v34 = vsub.f32 %v3210_v22, %v482_v19 }
 0x1c4   :  { %v452_v37 = vpop.xlane.xlu1 %451 }
 0x1c5   :  { %v484_v21 = vmul.f32 0.0078125, %v452_v37  ;;  %603 = vadd.xlane.f32.xlu1 %v544_v32  ;;  %605 = vadd.xlane.f32.xlu0 %v545_v20  ;;  %v3390_v39 = vsub.f32 %v3215_v23, %v483_v53  ;;  %v546_v59 = vmul.f32 %v3384_v34, %v3384_v34 }
 0x1c7   :  { %v547_v22 = vmul.f32 %v3390_v39, %v3390_v39  ;;  %v3397_v13 = vsub.f32 %v3219_v25, %v484_v21 }
 0x1c9   :  { %607 = vadd.xlane.f32.xlu1 %v546_v59  ;;  %609 = vadd.xlane.f32.xlu0 %v547_v22  ;;  %v548_v23 = vmul.f32 %v3397_v13, %v3397_v13 }
 0x1cd   :  { %611 = vadd.xlane.f32.xlu1 %v548_v23 }
 0x21a   :  { %v550_v25 = vpop.xlane.xlu0 %549 }
 0x21b   :  { %v613_v60 = vmul.f32 0.0078125, %v550_v25 }
 0x21d   :  { %v645_v14 = vadd.f32 1e-05, %v613_v60 }
 0x21e   :  { %v552_v1 = vpop.xlane.xlu1 %551  ;;  %v554_v51 = vpop.xlane.xlu0 %553 }
 0x21f   :  { %2778 = vrsqrt.f32 %v645_v14  ;;  %v614_v15 = vmul.f32 0.0078125, %v552_v1  ;;  %v615_v54 = vmul.f32 0.0078125, %v554_v51 }
 0x221   :  { %v646_v6 = vadd.f32 1e-05, %v614_v15  ;;  %v647_v56 = vadd.f32 1e-05, %v615_v54 }
 0x222   :  { %v556_v16 = vpop.xlane.xlu1 %555  ;;  %v558_v61 = vpop.xlane.xlu0 %557 }
 0x223   :  { %2780 = vrsqrt.f32 %v646_v6  ;;  %v616_v62 = vmul.f32 0.0078125, %v556_v16  ;;  %v617_v17 = vmul.f32 0.0078125, %v558_v61 }
 0x224   :  { %2782 = vrsqrt.f32 %v647_v56 }
 0x225   :  { %v648_v8 = vadd.f32 1e-05, %v616_v62  ;;  %v649_v2 = vadd.f32 1e-05, %v617_v17 }
 0x226   :  { %v560_v9 = vpop.xlane.xlu1 %559  ;;  %v562_v18 = vpop.xlane.xlu0 %561 }
 0x227   :  { %2784 = vrsqrt.f32 %v648_v8  ;;  %v618_v5 = vmul.f32 0.0078125, %v560_v9  ;;  %v619_v26 = vmul.f32 0.0078125, %v562_v18 }
 0x228   :  { %2786 = vrsqrt.f32 %v649_v2 }
 0x229   :  { %v2779_v19 = vpop.eup %2778  ;;  %v650_v29 = vadd.f32 1e-05, %v618_v5  ;;  %v651_v53 = vadd.f32 1e-05, %v619_v26 }
 0x22a   :  { %v3408_v32 = vmul.f32 %v2779_v19, %v3224_v33  ;;  %v564_v20 = vpop.xlane.xlu1 %563  ;;  %v566_v37 = vpop.xlane.xlu0 %565 }
 0x22b   :  { %2788 = vrsqrt.f32 %v650_v29  ;;  %v620_v12 = vmul.f32 0.0078125, %v564_v20  ;;  %v621_v21 = vmul.f32 0.0078125, %v566_v37 }
 0x22c   :  { %2790 = vrsqrt.f32 %v651_v53  ;;  %v741_v59 = vmul.f32 %v3408_v32, %v3408_v32 }
 0x22d   :  { %v2781_v22 = vpop.eup %2780  ;;  %v652_v44 = vadd.f32 1e-05, %v620_v12  ;;  %v653_v23 = vadd.f32 1e-05, %v621_v21 }
 0x22e   :  { %v2783_v30 = vpop.eup %2782  ;;  %v3413_v25 = vmul.f32 %v2781_v22, %v3232_v40  ;;  %v568_v60 = vpop.xlane.xlu1 %567  ;;  %v773_v33 = vmul.f32 %v741_v59, %v3408_v32 }
 0x22f   :  { %v570_v14 = vpop.xlane.xlu0 %569  ;;  %v3417_v1 = vmul.f32 %v2783_v30, %v3229_v24  ;;  %2792 = vrsqrt.f32 %v652_v44  ;;  %v622_v51 = vmul.f32 0.0078125, %v568_v60 }
 0x230   :  { %v623_v15 = vmul.f32 0.0078125, %v570_v14  ;;  %2794 = vrsqrt.f32 %v653_v23  ;;  %v742_v54 = vmul.f32 %v3413_v25, %v3413_v25  ;;  %v805_v6 = vmul.f32 0.044715, %v773_v33 }
 0x231   :  { %v2785_v56 = vpop.eup %2784  ;;  %v743_v40 = vmul.f32 %v3417_v1, %v3417_v1  ;;  %v654_v16 = vadd.f32 1e-05, %v622_v51 }
 0x232   :  { %v655_v61 = vadd.f32 1e-05, %v623_v15  ;;  %v2787_v62 = vpop.eup %2786  ;;  %v3424_v17 = vmul.f32 %v2785_v56, %v3239_v45  ;;  %v572_v24 = vpop.xlane.xlu1 %571  ;;  %v774_v2 = vmul.f32 %v742_v54, %v3413_v25  ;;  %v837_v9 = vadd.f32 %v805_v6, %v3408_v32 }
 0x233   :  { %v574_v8 = vpop.xlane.xlu0 %573  ;;  %v775_v18 = vmul.f32 %v743_v40, %v3417_v1  ;;  %v3430_v5 = vmul.f32 %v2787_v62, %v3242_v27  ;;  %2796 = vrsqrt.f32 %v654_v16  ;;  %v624_v26 = vmul.f32 0.0078125, %v572_v24 }
 0x234   :  { %v744_v19 = vmul.f32 %v3424_v17, %v3424_v17  ;;  %2798 = vrsqrt.f32 %v655_v61  ;;  %v625_v29 = vmul.f32 0.0078125, %v574_v8  ;;  %v806_v45 = vmul.f32 0.044715, %v774_v2 }
 0x235   :  { %v2789_v53 = vpop.eup %2788  ;;  %v656_v20 = vadd.f32 1e-05, %v624_v26  ;;  %v869_v37 = vmul.f32 0.7978846, %v837_v9  ;;  %v807_v12 = vmul.f32 0.044715, %v775_v18  ;;  %v745_v21 = vmul.f32 %v3430_v5, %v3430_v5 }
 0x236   :  { %v2791_v59 = vpop.eup %2790  ;;  %v776_v22 = vmul.f32 %v744_v19, %v3424_v17  ;;  %v3438_v27 = vmul.f32 %v2789_v53, %v3249_v55  ;;  %v657_v44 = vadd.f32 1e-05, %v625_v29  ;;  %v576_v23 = vpop.xlane.xlu1 %575  ;;  %v838_v60 = vadd.f32 %v806_v45, %v3413_v25 }
 0x237   :  { %v578_v30 = vpop.xlane.xlu0 %577  ;;  %v3442_v14 = vmul.f32 %v2791_v59, %v3252_v57  ;;  %2800 = vrsqrt.f32 %v656_v20  ;;  %v626_v33 = vmul.f32 0.0078125, %v576_v23  ;;  %v839_v6 = vadd.f32 %v807_v12, %v3417_v1 }
 0x238   :  { %v627_v51 = vmul.f32 0.0078125, %v578_v30  ;;  %2802 = vrsqrt.f32 %v657_v44  ;;  %v870_v15 = vmul.f32 0.7978846, %v838_v60  ;;  %v808_v54 = vmul.f32 0.044715, %v776_v22 }
 0x239   :  { %v2793_v56 = vpop.eup %2792  ;;  %v658_v40 = vadd.f32 1e-05, %v626_v33  ;;  %2804 = vtanh.f32 %v869_v37  ;;  %v746_v16 = vmul.f32 %v3438_v27, %v3438_v27  ;;  %v871_v2 = vmul.f32 0.7978846, %v839_v6 }
 0x23a   :  { %v659_v55 = vadd.f32 1e-05, %v627_v51  ;;  %v2795_v61 = vpop.eup %2794  ;;  %v3448_v62 = vmul.f32 %v2793_v56, %v3259_v0  ;;  %v580_v57 = vpop.xlane.xlu1 %579  ;;  %2806 = vtanh.f32 %v870_v15  ;;  %v840_v8 = vadd.f32 %v808_v54, %v3424_v17 }
 0x23b   :  { %v582_v24 = vpop.xlane.xlu0 %581  ;;  %v3452_v9 = vmul.f32 %v2795_v61, %v3262_v3  ;;  %2808 = vrsqrt.f32 %v658_v40  ;;  %v628_v18 = vmul.f32 0.0078125, %v580_v57  ;;  %v777_v29 = vmul.f32 %v745_v21, %v3430_v5 }
 0x23c   :  { %v629_v26 = vmul.f32 0.0078125, %v582_v24  ;;  %2810 = vrsqrt.f32 %v659_v55  ;;  %v872_v19 = vmul.f32 0.7978846, %v840_v8  ;;  %v778_v45 = vmul.f32 %v746_v16, %v3438_v27 }
 0x23d   :  { %v2797_v0 = vpop.eup %2796  ;;  %v660_v53 = vadd.f32 1e-05, %v628_v18  ;;  %2812 = vtanh.f32 %v871_v2  ;;  %v747_v37 = vmul.f32 %v3442_v14, %v3442_v14  ;;  %v809_v44 = vmul.f32 0.044715, %v777_v29 }
 0x23e   :  { %v661_v20 = vadd.f32 1e-05, %v629_v26  ;;  %v2799_v12 = vpop.eup %2798  ;;  %v3459_v3 = vmul.f32 %v2797_v0, %v3269_v28  ;;  %v584_v59 = vpop.xlane.xlu1 %583  ;;  %2814 = vtanh.f32 %v872_v19  ;;  %v810_v23 = vmul.f32 0.044715, %v778_v45 }
 0x23f   :  { %v586_v22 = vpop.xlane.xlu0 %585  ;;  %v3462_v21 = vmul.f32 %v2799_v12, %v3272_v31  ;;  %2816 = vrsqrt.f32 %v660_v53  ;;  %v630_v30 = vmul.f32 0.0078125, %v584_v59  ;;  %v841_v33 = vadd.f32 %v809_v44, %v3430_v5 }
 0x240   :  { %v631_v60 = vmul.f32 0.0078125, %v586_v22  ;;  %2818 = vrsqrt.f32 %v661_v20  ;;  %v842_v51 = vadd.f32 %v810_v23, %v3438_v27  ;;  %v748_v28 = vmul.f32 %v3448_v62, %v3448_v62 }
 0x241   :  { %v2801_v15 = vpop.eup %2800  ;;  %v662_v54 = vadd.f32 1e-05, %v630_v30  ;;  %v779_v56 = vmul.f32 %v747_v37, %v3442_v14  ;;  %v3471_v31 = vmul.f32 %v3452_v9, %v3452_v9  ;;  %v873_v57 = vmul.f32 0.7978846, %v841_v33 }
 0x242   :  { %v663_v6 = vadd.f32 1e-05, %v631_v60  ;;  %v2803_v40 = vpop.eup %2802  ;;  %v3474_v55 = vmul.f32 %v2801_v15, %v3279_v38  ;;  %v588_v16 = vpop.xlane.xlu1 %587  ;;  %v874_v24 = vmul.f32 0.7978846, %v842_v51  ;;  %v780_v8 = vmul.f32 %v748_v28, %v3448_v62 }
 0x243   :  { %v590_v61 = vpop.xlane.xlu0 %589  ;;  %v2805_v2 = vpop.eup %2804  ;;  %v3478_v18 = vmul.f32 %v2803_v40, %v3282_v42  ;;  %2820 = vrsqrt.f32 %v662_v54  ;;  %v632_v26 = vmul.f32 0.0078125, %v588_v16  ;;  %v811_v0 = vmul.f32 0.044715, %v779_v56 }
 0x244   :  { %v633_v19 = vmul.f32 0.0078125, %v590_v61  ;;  %v2807_v29 = vpop.eup %2806  ;;  %2822 = vrsqrt.f32 %v663_v6  ;;  %v933_v45 = vadd.f32 1.0, %v2805_v2  ;;  %v812_v53 = vmul.f32 0.044715, %v780_v8 }
 0x245   :  { %v2809_v38 = vpop.eup %2808  ;;  %v664_v20 = vadd.f32 1e-05, %v632_v26  ;;  %v934_v12 = vadd.f32 1.0, %v2807_v29  ;;  %2824 = vtanh.f32 %v873_v57  ;;  %v843_v30 = vadd.f32 %v811_v0, %v3442_v14 }
 0x246   :  { %v665_v37 = vadd.f32 1e-05, %v633_v19  ;;  %v2811_v59 = vpop.eup %2810  ;;  %v3481_v22 = vmul.f32 %v2809_v38, %v3289_v49  ;;  %v592_v44 = vpop.xlane.xlu1 %591  ;;  %v965_v23 = vmul.f32 0.5, %v933_v45  ;;  %2826 = vtanh.f32 %v874_v24 }
 0x247   :  { %v594_v42 = vpop.xlane.xlu0 %593  ;;  %v2813_v60 = vpop.eup %2812  ;;  %v3485_v33 = vmul.f32 %v2811_v59, %v3292_v36  ;;  %2828 = vrsqrt.f32 %v664_v20  ;;  %v634_v51 = vmul.f32 0.0078125, %v592_v44  ;;  %v966_v54 = vmul.f32 0.5, %v934_v12 }
 0x248   :  { %v635_v28 = vmul.f32 0.0078125, %v594_v42  ;;  %v2815_v15 = vpop.eup %2814  ;;  %2830 = vrsqrt.f32 %v665_v37  ;;  %v997_v6 = vmul.f32 %v965_v23, %v3408_v32  ;;  %v935_v49 = vadd.f32 1.0, %v2813_v60 }
 0x249   :  { %v2817_v56 = vpop.eup %2816  ;;  %v666_v40 = vadd.f32 1e-05, %v634_v51  ;;  %v936_v61 = vadd.f32 1.0, %v2815_v15  ;;  %v844_v57 = vadd.f32 %v812_v53, %v3448_v62  ;;  %v998_v26 = vmul.f32 %v966_v54, %v3413_v25 }
 0x24a   :  { %v667_v16 = vadd.f32 1e-05, %v635_v28  ;;  %v2819_v24 = vpop.eup %2818  ;;  %v3490_v8 = vmul.f32 %v2817_v56, %v3299_v35  ;;  %v596_v36 = vpop.xlane.xlu1 %595  ;;  %v967_v19 = vmul.f32 0.5, %v935_v49  ;;  %v875_v29 = vmul.f32 0.7978846, %v843_v30 }
 0x24b   :  { %v598_v2 = vpop.xlane.xlu0 %597  ;;  %v3494_v45 = vmul.f32 %v2819_v24, %v3302_v41  ;;  %2832 = vrsqrt.f32 %v666_v40  ;;  %v636_v32 = vmul.f32 0.0078125, %v596_v36  ;;  %v1029_v38 = vpack.c.bf16 %v998_v26, %v997_v6 }
 0x24c   :  { %v637_v0 = vmul.f32 0.0078125, %v598_v2  ;;  %2834 = vrsqrt.f32 %v667_v16  ;;  %v968_v20 = vmul.f32 0.5, %v936_v61  ;;  %v999_v53 = vmul.f32 %v967_v19, %v3417_v1 }
 0x24d   :  { %v2821_v37 = vpop.eup %2820  ;;  %v668_v35 = vadd.f32 1e-05, %v636_v32  ;;  %v876_v59 = vmul.f32 0.7978846, %v844_v57  ;;  %2836 = vtanh.f32 %v875_v29  ;;  %2642 = vmatprep.mubr.bf16.mxu1 %v1029_v38  ;;  %v750_v30 = vmul.f32 %v3459_v3, %v3459_v3 }
 0x24e   :  { %v669_v12 = vadd.f32 1e-05, %v637_v0  ;;  %v2823_v44 = vpop.eup %2822  ;;  %v3498_v25 = vmul.f32 %v2821_v37, %v3309_v46  ;;  %v600_v41 = vpop.xlane.xlu1 %599  ;;  %v1000_v23 = vmul.f32 %v968_v20, %v3424_v17  ;;  %v781_v1 = vmul.f32 %v3471_v31, %v3452_v9 }
 0x24f   :  { %v602_v42 = vpop.xlane.xlu0 %601  ;;  %v2825_v60 = vpop.eup %2824  ;;  %v3506_v51 = vmul.f32 %v2823_v44, %v3312_v47  ;;  %2838 = vrsqrt.f32 %v668_v35  ;;  %v638_v28 = vmul.f32 0.0078125, %v600_v41  ;;  %v782_v49 = vmul.f32 %v750_v30, %v3459_v3 }
 0x250   :  { %v639_v15 = vmul.f32 0.0078125, %v602_v42  ;;  %v2827_v46 = vpop.eup %2826  ;;  %2840 = vrsqrt.f32 %v669_v12  ;;  %v1030_v54 = vpack.c.bf16 %v1000_v23, %v999_v53  ;;  %v937_v6 = vadd.f32 1.0, %v2825_v60 }
 0x251   :  { %v2829_v17 = vpop.eup %2828  ;;  %v670_v56 = vadd.f32 1e-05, %v638_v28  ;;  %v938_v16 = vadd.f32 1.0, %v2827_v46  ;;  %2842 = vtanh.f32 %v876_v59  ;;  %v813_v36 = vmul.f32 0.044715, %v781_v1 }
 0x252   :  { %v671_v40 = vadd.f32 1e-05, %v639_v15  ;;  %v2831_v61 = vpop.eup %2830  ;;  %v3510_v31 = vmul.f32 %v2829_v17, %v3319_v48  ;;  %2643 = vmatmul.mubr.bf16.vlgmr.msra.gmra.mrb[16].mxu1 %v1030_v54  ;;  %v604_v47 = vpop.xlane.xlu1 %603  ;;  %v969_v24 = vmul.f32 0.5, %v937_v6  ;;  %v814_v2 = vmul.f32 0.044715, %v782_v49 }
 0x253   :  { %v606_v57 = vpop.xlane.xlu0 %605  ;;  %v3513_v26 = vmul.f32 %v2831_v61, %v3325_v11  ;;  %2844 = vrsqrt.f32 %v670_v56  ;;  %v640_v19 = vmul.f32 0.0078125, %v604_v47  ;;  %v970_v32 = vmul.f32 0.5, %v938_v16 }
 0x254   :  { %v641_v29 = vmul.f32 0.0078125, %v606_v57  ;;  %2846 = vrsqrt.f32 %v671_v40  ;;  %v1001_v0 = vmul.f32 %v969_v24, %v3430_v5  ;;  %v845_v38 = vadd.f32 %v813_v36, %v3452_v9 }
 0x255   :  { %v2833_v48 = vpop.eup %2832  ;;  %v672_v20 = vadd.f32 1e-05, %v640_v19  ;;  %v846_v37 = vadd.f32 %v814_v2, %v3459_v3  ;;  %v751_v35 = vmul.f32 %v3462_v21, %v3462_v21  ;;  %v1002_v59 = vmul.f32 %v970_v32, %v3438_v27 }
 0x256   :  { %v673_v53 = vadd.f32 1e-05, %v641_v29  ;;  %v2835_v12 = vpop.eup %2834  ;;  %v3521_v11 = vmul.f32 %v2833_v48, %v3332_v58  ;;  %v608_v44 = vpop.xlane.xlu1 %607  ;;  %v877_v42 = vmul.f32 0.7978846, %v845_v38  ;;  %v752_v5 = vmul.f32 %v3474_v55, %v3474_v55 }
 0x257   :  { %v610_v41 = vpop.xlane.xlu0 %609  ;;  %v2837_v23 = vpop.eup %2836  ;;  %v3527_v30 = vmul.f32 %v2835_v12, %v3338_v43  ;;  %2848 = vrsqrt.f32 %v672_v20  ;;  %v642_v1 = vmul.f32 0.0078125, %v608_v44  ;;  %v1031_v28 = vpack.c.bf16 %v1002_v59, %v1001_v0 }
 0x258   :  { %v643_v60 = vmul.f32 0.0078125, %v610_v41  ;;  %2850 = vrsqrt.f32 %v673_v53  ;;  %v939_v15 = vadd.f32 1.0, %v2837_v23  ;;  %v878_v58 = vmul.f32 0.7978846, %v846_v37 }
 0x259   :  { %v2839_v46 = vpop.eup %2838  ;;  %v674_v54 = vadd.f32 1e-05, %v642_v1  ;;  %2852 = vtanh.f32 %v877_v42  ;;  %v783_v6 = vmul.f32 %v751_v35, %v3462_v21  ;;  %2646 = vmatprep.mubr.bf16.mxu1 %v1031_v28  ;;  %v784_v40 = vmul.f32 %v752_v5, %v3474_v55 }
 0x25a   :  { %v675_v27 = vadd.f32 1e-05, %v643_v60  ;;  %v2841_v49 = vpop.eup %2840  ;;  %v3531_v17 = vmul.f32 %v2839_v46, %v3345_v50  ;;  %v971_v43 = vmul.f32 0.5, %v939_v15  ;;  %v612_v56 = vpop.xlane.xlu1 %611  ;;  %2854 = vtanh.f32 %v878_v58 }
 0x25b   :  { %v2843_v16 = vpop.eup %2842  ;;  %v3535_v61 = vmul.f32 %v2841_v49, %v3351_v52  ;;  %2856 = vrsqrt.f32 %v674_v54  ;;  %v644_v47 = vmul.f32 0.0078125, %v612_v56  ;;  %v815_v57 = vmul.f32 0.044715, %v783_v6 }
 0x25c   :  { %2858 = vrsqrt.f32 %v675_v27  ;;  %v940_v24 = vadd.f32 1.0, %v2843_v16  ;;  %v1003_v36 = vmul.f32 %v971_v43, %v3442_v14  ;;  %v816_v2 = vmul.f32 0.044715, %v784_v40 }
 0x25d   :  { %v2845_v50 = vpop.eup %2844  ;;  %v676_v19 = vadd.f32 1e-05, %v644_v47  ;;  %v847_v29 = vadd.f32 %v815_v57, %v3462_v21  ;;  %v753_v32 = vmul.f32 %v3478_v18, %v3478_v18  ;;  %v754_v0 = vmul.f32 %v3481_v22, %v3481_v22 }
 0x25e   :  { %v2847_v52 = vpop.eup %2846  ;;  %v3544_v38 = vmul.f32 %v2845_v50, %v3358_v7  ;;  %v972_v48 = vmul.f32 0.5, %v940_v24  ;;  %v848_v20 = vadd.f32 %v816_v2, %v3474_v55  ;;  %v755_v14 = vmul.f32 %v3485_v33, %v3485_v33 }
 0x25f   :  { %v3550_v53 = vmul.f32 %v2847_v52, %v3364_v63  ;;  %2860 = vrsqrt.f32 %v676_v19  ;;  %v879_v37 = vmul.f32 0.7978846, %v847_v29  ;;  %v785_v35 = vmul.f32 %v753_v32, %v3478_v18 }
 0x260   :  { %v1004_v12 = vmul.f32 %v972_v48, %v3448_v62  ;;  %v880_v59 = vmul.f32 0.7978846, %v848_v20  ;;  %v786_v44 = vmul.f32 %v754_v0, %v3481_v22  ;;  %v756_v7 = vmul.f32 %v3490_v8, %v3490_v8 }
 0x261   :  { %v2849_v41 = vpop.eup %2848  ;;  %2862 = vtanh.f32 %v879_v37  ;;  %v817_v42 = vmul.f32 0.044715, %v785_v35  ;;  %v787_v5 = vmul.f32 %v755_v14, %v3485_v33  ;;  %v757_v63 = vmul.f32 %v3494_v45, %v3494_v45 }
 0x262   :  { %v2851_v23 = vpop.eup %2850  ;;  %v3561_v1 = vmul.f32 %v2849_v41, %v3371_v4  ;;  %v1032_v60 = vpack.c.bf16 %v1004_v12, %v1003_v36  ;;  %2864 = vtanh.f32 %v880_v59  ;;  %v818_v62 = vmul.f32 0.044715, %v786_v44 }
 0x263   :  { %v2853_v28 = vpop.eup %2852  ;;  %v3564_v15 = vmul.f32 %v2851_v23, %v3377_v10  ;;  %v849_v58 = vadd.f32 %v817_v42, %v3478_v18  ;;  %v788_v46 = vmul.f32 %v756_v7, %v3490_v8  ;;  %v819_v54 = vmul.f32 0.044715, %v787_v5 }
 0x264   :  { %v2855_v27 = vpop.eup %2854  ;;  %2647 = vmatmul.mubr.bf16.gmra.mrb[20].mxu1 %v1032_v60  ;;  %v941_v6 = vadd.f32 1.0, %v2853_v28  ;;  %v850_v49 = vadd.f32 %v818_v62, %v3481_v22  ;;  %v758_v4 = vmul.f32 %v3498_v25, %v3498_v25  ;;  %v789_v43 = vmul.f32 %v757_v63, %v3494_v45 }
 0x265   :  { %v2857_v56 = vpop.eup %2856  ;;  %v942_v40 = vadd.f32 1.0, %v2855_v27  ;;  %v881_v16 = vmul.f32 0.7978846, %v849_v58  ;;  %v820_v10 = vmul.f32 0.044715, %v788_v46  ;;  %v851_v47 = vadd.f32 %v819_v54, %v3485_v33 }
 0x266   :  { %v2859_v57 = vpop.eup %2858  ;;  %v3574_v24 = vmul.f32 %v2857_v56, %v3384_v34  ;;  %v973_v36 = vmul.f32 0.5, %v941_v6  ;;  %v882_v2 = vmul.f32 0.7978846, %v850_v49  ;;  %v790_v50 = vmul.f32 %v758_v4, %v3498_v25 }
 0x267   :  { %v3578_v19 = vmul.f32 %v2859_v57, %v3390_v39  ;;  %v974_v29 = vmul.f32 0.5, %v942_v40  ;;  %2866 = vtanh.f32 %v881_v16  ;;  %v852_v32 = vadd.f32 %v820_v10, %v3490_v8 }
 0x268   :  { %v1005_v0 = vmul.f32 %v973_v36, %v3452_v9  ;;  %2868 = vtanh.f32 %v882_v2  ;;  %v883_v52 = vmul.f32 0.7978846, %v851_v47  ;;  %v821_v48 = vmul.f32 0.044715, %v789_v43 }
 0x269   :  { %v2861_v20 = vpop.eup %2860  ;;  %v1006_v34 = vmul.f32 %v974_v29, %v3459_v3  ;;  %v884_v14 = vmul.f32 0.7978846, %v852_v32  ;;  %v822_v37 = vmul.f32 0.044715, %v790_v50  ;;  %v759_v35 = vmul.f32 %v3506_v51, %v3506_v51 }
 0x26a   :  { %v3586_v39 = vmul.f32 %v2861_v20, %v3397_v13  ;;  %2870 = vtanh.f32 %v883_v52  ;;  %v853_v12 = vadd.f32 %v821_v48, %v3494_v45  ;;  %v760_v9 = vmul.f32 %v3510_v31, %v3510_v31 }
 0x26b   :  { %v2863_v59 = vpop.eup %2862  ;;  %v1033_v44 = vpack.c.bf16 %v1006_v34, %v1005_v0  ;;  %2872 = vtanh.f32 %v884_v14  ;;  %v854_v7 = vadd.f32 %v822_v37, %v3498_v25  ;;  %v791_v3 = vmul.f32 %v759_v35, %v3506_v51 }
 0x26c   :  { %v2865_v41 = vpop.eup %2864  ;;  %v943_v42 = vadd.f32 1.0, %v2863_v59  ;;  %v885_v5 = vmul.f32 0.7978846, %v853_v12  ;;  %v792_v63 = vmul.f32 %v760_v9, %v3510_v31  ;;  %v761_v13 = vmul.f32 %v3513_v26, %v3513_v26 }
 0x26d   :  { %2650 = vmatprep.mubr.bf16.mxu1 %v1033_v44  ;;  %v944_v23 = vadd.f32 1.0, %v2865_v41  ;;  %v886_v60 = vmul.f32 0.7978846, %v854_v7  ;;  %v823_v62 = vmul.f32 0.044715, %v791_v3  ;;  %v762_v28 = vmul.f32 %v3521_v11, %v3521_v11 }
 0x26e   :  { %v975_v58 = vmul.f32 0.5, %v943_v42  ;;  %2874 = vtanh.f32 %v885_v5  ;;  %v824_v46 = vmul.f32 0.044715, %v792_v63  ;;  %v793_v54 = vmul.f32 %v761_v13, %v3513_v26 }
 0x26f   :  { %v976_v27 = vmul.f32 0.5, %v944_v23  ;;  %2876 = vtanh.f32 %v886_v60  ;;  %v855_v6 = vadd.f32 %v823_v62, %v3506_v51  ;;  %v794_v49 = vmul.f32 %v762_v28, %v3521_v11 }
 0x270   :  { %v1007_v4 = vmul.f32 %v975_v58, %v3462_v21  ;;  %v856_v43 = vadd.f32 %v824_v46, %v3510_v31  ;;  %v825_v56 = vmul.f32 0.044715, %v793_v54  ;;  %v763_v40 = vmul.f32 %v3527_v30, %v3527_v30 }
 0x271   :  { %v2867_v16 = vpop.eup %2866  ;;  %v1008_v10 = vmul.f32 %v976_v27, %v3474_v55  ;;  %v887_v47 = vmul.f32 0.7978846, %v855_v6  ;;  %v826_v57 = vmul.f32 0.044715, %v794_v49  ;;  %v764_v36 = vmul.f32 %v3531_v17, %v3531_v17 }
 0x272   :  { %v2869_v2 = vpop.eup %2868  ;;  %v945_v50 = vadd.f32 1.0, %v2867_v16  ;;  %v888_v29 = vmul.f32 0.7978846, %v856_v43  ;;  %v857_v32 = vadd.f32 %v825_v56, %v3513_v26  ;;  %v795_v21 = vmul.f32 %v763_v40, %v3527_v30 }
 0x273   :  { %v1034_v0 = vpack.c.bf16 %v1008_v10, %v1007_v4  ;;  %v946_v52 = vadd.f32 1.0, %v2869_v2  ;;  %2878 = vtanh.f32 %v887_v47  ;;  %v858_v48 = vadd.f32 %v826_v57, %v3521_v11 }
 0x274   :  { %v2871_v20 = vpop.eup %2870  ;;  %v977_v34 = vmul.f32 0.5, %v945_v50  ;;  %2880 = vtanh.f32 %v888_v29  ;;  %v889_v55 = vmul.f32 0.7978846, %v857_v32  ;;  %v796_v14 = vmul.f32 %v764_v36, %v3531_v17 }
 0x275   :  { %v2873_v37 = vpop.eup %2872  ;;  %2651 = vmatmul.mubr.bf16.gmra.mrb[24].mxu1 %v1034_v0  ;;  %v978_v35 = vmul.f32 0.5, %v946_v52  ;;  %v947_v12 = vadd.f32 1.0, %v2871_v20  ;;  %v890_v9 = vmul.f32 0.7978846, %v858_v48  ;;  %v827_v59 = vmul.f32 0.044715, %v795_v21 }
 0x276   :  { %v1009_v44 = vmul.f32 %v977_v34, %v3478_v18  ;;  %v948_v7 = vadd.f32 1.0, %v2873_v37  ;;  %2882 = vtanh.f32 %v889_v55  ;;  %v828_v3 = vmul.f32 0.044715, %v796_v14 }
 0x277   :  { %v1010_v41 = vmul.f32 %v978_v35, %v3481_v22  ;;  %v979_v42 = vmul.f32 0.5, %v947_v12  ;;  %2884 = vtanh.f32 %v890_v9  ;;  %v859_v5 = vadd.f32 %v827_v59, %v3527_v30 }
 0x278   :  { %v2875_v63 = vpop.eup %2874  ;;  %v980_v13 = vmul.f32 0.5, %v948_v7  ;;  %v860_v23 = vadd.f32 %v828_v3, %v3531_v17  ;;  %v765_v60 = vmul.f32 %v3535_v61, %v3535_v61  ;;  %v766_v62 = vmul.f32 %v3544_v38, %v3544_v38 }
 0x279   :  { %v2877_v18 = vpop.eup %2876  ;;  %v1035_v28 = vpack.c.bf16 %v1010_v41, %v1009_v44  ;;  %v1011_v58 = vmul.f32 %v979_v42, %v3485_v33  ;;  %v949_v46 = vadd.f32 1.0, %v2875_v63  ;;  %v891_v22 = vmul.f32 0.7978846, %v859_v5 }
 0x27a   :  { %v1012_v54 = vmul.f32 %v980_v13, %v3490_v8  ;;  %v950_v27 = vadd.f32 1.0, %v2877_v18  ;;  %v892_v6 = vmul.f32 0.7978846, %v860_v23  ;;  %v797_v49 = vmul.f32 %v765_v60, %v3535_v61 }
 0x27b   :  { %2654 = vmatprep.mubr.bf16.mxu1 %v1035_v28  ;;  %v981_v4 = vmul.f32 0.5, %v949_v46  ;;  %2886 = vtanh.f32 %v891_v22  ;;  %v798_v43 = vmul.f32 %v766_v62, %v3544_v38  ;;  %v767_v56 = vmul.f32 %v3550_v53, %v3550_v53 }
 0x27c   :  { %v1036_v40 = vpack.c.bf16 %v1012_v54, %v1011_v58  ;;  %v982_v16 = vmul.f32 0.5, %v950_v27  ;;  %2888 = vtanh.f32 %v892_v6  ;;  %v829_v33 = vmul.f32 0.044715, %v797_v49 }
 0x27d   :  { %v2879_v10 = vpop.eup %2878  ;;  %v1013_v47 = vmul.f32 %v981_v4, %v3494_v45  ;;  %v830_v8 = vmul.f32 0.044715, %v798_v43  ;;  %v768_v57 = vmul.f32 %v3561_v1, %v3561_v1  ;;  %v799_v36 = vmul.f32 %v767_v56, %v3550_v53 }
 0x27e   :  { %v2881_v2 = vpop.eup %2880  ;;  %2655 = vmatmul.mubr.bf16.gmra.mrb[28].mxu1 %v1036_v40  ;;  %v1014_v50 = vmul.f32 %v982_v16, %v3498_v25  ;;  %v951_v29 = vadd.f32 1.0, %v2879_v10  ;;  %v861_v32 = vadd.f32 %v829_v33, %v3535_v61  ;;  %v769_v21 = vmul.f32 %v3564_v15, %v3564_v15 }
 0x27f   :  { %v952_v0 = vadd.f32 1.0, %v2881_v2  ;;  %v862_v52 = vadd.f32 %v830_v8, %v3544_v38  ;;  %v800_v45 = vmul.f32 %v768_v57, %v3561_v1  ;;  %v831_v48 = vmul.f32 0.044715, %v799_v36 }
 0x280   :  { %v2883_v20 = vpop.eup %2882  ;;  %v1037_v34 = vpack.c.bf16 %v1014_v50, %v1013_v47  ;;  %v983_v55 = vmul.f32 0.5, %v951_v29  ;;  %v893_v14 = vmul.f32 0.7978846, %v861_v32  ;;  %v770_v37 = vmul.f32 %v3574_v24, %v3574_v24 }
 0x281   :  { %v2885_v25 = vpop.eup %2884  ;;  %v984_v35 = vmul.f32 0.5, %v952_v0  ;;  %v953_v12 = vadd.f32 1.0, %v2883_v20  ;;  %v894_v9 = vmul.f32 0.7978846, %v862_v52  ;;  %v832_v59 = vmul.f32 0.044715, %v800_v45 }
 0x282   :  { %2658 = vmatprep.mubr.bf16.mxu1 %v1037_v34  ;;  %v1015_v44 = vmul.f32 %v983_v55, %v3506_v51  ;;  %v954_v7 = vadd.f32 1.0, %v2885_v25  ;;  %2890 = vtanh.f32 %v893_v14  ;;  %v863_v3 = vadd.f32 %v831_v48, %v3550_v53 }
 0x283   :  { %v1016_v41 = vmul.f32 %v984_v35, %v3510_v31  ;;  %v985_v42 = vmul.f32 0.5, %v953_v12  ;;  %2892 = vtanh.f32 %v894_v9  ;;  %v864_v5 = vadd.f32 %v832_v59, %v3561_v1 }
 0x284   :  { %v986_v63 = vmul.f32 0.5, %v954_v7  ;;  %v895_v13 = vmul.f32 0.7978846, %v863_v3  ;;  %v801_v23 = vmul.f32 %v769_v21, %v3564_v15  ;;  %v802_v60 = vmul.f32 %v770_v37, %v3574_v24 }
 0x285   :  { %v2887_v62 = vpop.eup %2886  ;;  %v1038_v18 = vpack.c.bf16 %v1016_v41, %v1015_v44  ;;  %v1017_v51 = vmul.f32 %v985_v42, %v3513_v26  ;;  %v896_v28 = vmul.f32 0.7978846, %v864_v5  ;;  %v771_v58 = vmul.f32 %v3578_v19, %v3578_v19 }
 0x286   :  { %v2889_v46 = vpop.eup %2888  ;;  %v1018_v31 = vmul.f32 %v986_v63, %v3521_v11  ;;  %v955_v22 = vadd.f32 1.0, %v2887_v62  ;;  %2894 = vtanh.f32 %v895_v13  ;;  %v833_v54 = vmul.f32 0.044715, %v801_v23 }
 0x287   :  { %2659 = vmatmul.mubr.bf16.gmra.mrb[32].mxu1 %v1038_v18  ;;  %v956_v27 = vadd.f32 1.0, %v2889_v46  ;;  %2896 = vtanh.f32 %v896_v28  ;;  %v834_v6 = vmul.f32 0.044715, %v802_v60  ;;  %v772_v49 = vmul.f32 %v3586_v39, %v3586_v39 }
 0x288   :  { %v1039_v4 = vpack.c.bf16 %v1018_v31, %v1017_v51  ;;  %v987_v43 = vmul.f32 0.5, %v955_v22  ;;  %v865_v26 = vadd.f32 %v833_v54, %v3564_v15  ;;  %v803_v56 = vmul.f32 %v771_v58, %v3578_v19  ;;  %v2770_v31 = vld [vmem:[%s4768_s5] sm:$0xff]   ;;  %v2775_v22 = vld [vmem:[%s4768_s5 + $0x28] sm:$0xff]   ;;  %v2776_v54 = vld [vmem:[%s4768_s5 + $0x30] sm:$0xff]  }
 0x289   :  { %v988_v40 = vmul.f32 0.5, %v956_v27  ;;  %v866_v16 = vadd.f32 %v834_v6, %v3574_v24  ;;  %v804_v11 = vmul.f32 %v772_v49, %v3586_v39  ;;  %2674 = vmatprep.subr.bf16.mxu0 %v2770_v31  ;;  %v2777_v27 = vld [vmem:[%s4768_s5 + $0x38] sm:$0xff]   ;;  %v3693_v6 = vld [vmem:[%s4769_s4] ss:$0 sm:$0xff] }
 0x28a   :  { %2662 = vmatprep.mubr.bf16.mxu1 %v1039_v4  ;;  %v897_v33 = vmul.f32 0.7978846, %v865_v26  ;;  %v835_v10 = vmul.f32 0.044715, %v803_v56  ;;  %v1019_v47 = vmul.f32 %v987_v43, %v3527_v30  ;;  %2675 = vmatpush3.bf16.msra.mxu0 %v2770_v31 }
 0x28b   :  { %v1020_v8 = vmul.f32 %v988_v40, %v3531_v17  ;;  %v898_v57 = vmul.f32 0.7978846, %v866_v16  ;;  %v836_v36 = vmul.f32 0.044715, %v804_v11 }
 0x28c   :  { %v2891_v2 = vpop.eup %2890  ;;  %2898 = vtanh.f32 %v897_v33  ;;  %v867_v50 = vadd.f32 %v835_v10, %v3578_v19 }
 0x28d   :  { %v2893_v29 = vpop.eup %2892  ;;  %v1040_v32 = vpack.c.bf16 %v1020_v8, %v1019_v47  ;;  %v957_v21 = vadd.f32 1.0, %v2891_v2  ;;  %2900 = vtanh.f32 %v898_v57  ;;  %v868_v0 = vadd.f32 %v836_v36, %v3586_v39 }
 0x28e   :  { %v958_v52 = vadd.f32 1.0, %v2893_v29  ;;  %v899_v45 = vmul.f32 0.7978846, %v867_v50 }
 0x28f   :  { %2663 = vmatmul.mubr.bf16.gmra.mrb[36].mxu1 %v1040_v32  ;;  %v989_v48 = vmul.f32 0.5, %v957_v21  ;;  %v900_v20 = vmul.f32 0.7978846, %v868_v0 }
 0x290   :  { %v2895_v30 = vpop.eup %2894  ;;  %v990_v34 = vmul.f32 0.5, %v958_v52  ;;  %2902 = vtanh.f32 %v899_v45 }
 0x291   :  { %v2897_v17 = vpop.eup %2896  ;;  %v959_v55 = vadd.f32 1.0, %v2895_v30  ;;  %2904 = vtanh.f32 %v900_v20  ;;  %v1021_v14 = vmul.f32 %v989_v48, %v3535_v61 }
 0x292   :  { %v1022_v37 = vmul.f32 %v990_v34, %v3544_v38  ;;  %v960_v25 = vadd.f32 1.0, %v2897_v17 }
 0x293   :  { %v991_v35 = vmul.f32 0.5, %v959_v55 }
 0x294   :  { %v1041_v12 = vpack.c.bf16 %v1022_v37, %v1021_v14  ;;  %v992_v9 = vmul.f32 0.5, %v960_v25 }
 0x295   :  { %v1023_v44 = vmul.f32 %v991_v35, %v3550_v53 }
 0x296   :  { %v2899_v59 = vpop.eup %2898  ;;  %2666 = vmatprep.mubr.bf16.mxu1 %v1041_v12  ;;  %v1024_v7 = vmul.f32 %v992_v9, %v3561_v1 }
 0x297   :  { %v2901_v3 = vpop.eup %2900  ;;  %v961_v41 = vadd.f32 1.0, %v2899_v59 }
 0x298   :  { %v1042_v42 = vpack.c.bf16 %v1024_v7, %v1023_v44  ;;  %v962_v5 = vadd.f32 1.0, %v2901_v3 }
 0x299   :  { %v993_v63 = vmul.f32 0.5, %v961_v41 }
 0x29a   :  { %v2903_v13 = vpop.eup %2902  ;;  %2667 = vmatmul.mubr.bf16.gmra.mrb[40].mxu1 %v1042_v42  ;;  %v994_v61 = vmul.f32 0.5, %v962_v5 }
 0x29b   :  { %v2905_v23 = vpop.eup %2904  ;;  %v963_v38 = vadd.f32 1.0, %v2903_v13  ;;  %v1025_v60 = vmul.f32 %v993_v63, %v3564_v15  ;;  %v2771_v15 = vld [vmem:[%s4768_s5 + $0x8] sm:$0xff]  }
 0x29c   :  { %v1026_v62 = vmul.f32 %v994_v61, %v3574_v24  ;;  %v964_v18 = vadd.f32 1.0, %v2905_v23  ;;  %v2772_v24 = vld [vmem:[%s4768_s5 + $0x10] sm:$0xff]   ;;  %2676 = vmatprep.subr.bf16.mxu0 %v2771_v15 }
 0x29d   :  { %v995_v51 = vmul.f32 0.5, %v963_v38  ;;  %2677 = vmatpush3.bf16.msra.mxu0 %v2771_v15 }
 0x29e   :  { %v1043_v28 = vpack.c.bf16 %v1026_v62, %v1025_v60  ;;  %v996_v53 = vmul.f32 0.5, %v964_v18  ;;  %2678 = vmatprep.subr.bf16.mxu0 %v2772_v24 }
 0x29f   :  { %v1027_v1 = vmul.f32 %v995_v51, %v3578_v19  ;;  %v2773_v19 = vld [vmem:[%s4768_s5 + $0x18] sm:$0xff]  }
 0x2a0   :  { %2670 = vmatprep.mubr.bf16.mxu1 %v1043_v28  ;;  %v1028_v58 = vmul.f32 %v996_v53, %v3586_v39  ;;  %v2774_v39 = vld [vmem:[%s4768_s5 + $0x20] sm:$0xff]  }
 0x2a1   :  { %2679 = vmatpush3.bf16.msra.mxu0 %v2772_v24 }
 0x2a2   :  { %v1044_v46 = vpack.c.bf16 %v1028_v58, %v1027_v1  ;;  %2680 = vmatprep.subr.bf16.mxu0 %v2773_v19 }
 0x2a4   :  { %2671 = vmatmul.mubr.bf16.gmra.mrb[44].mxu1 %v1044_v46 }
 0x2a5   :  { %2681 = vmatpush3.bf16.msra.mxu0 %v2773_v19 }
 0x2a6   :  { %2682 = vmatprep.subr.bf16.mxu0 %v2774_v39 }
 0x2a9   :  { %2683 = vmatpush3.bf16.msra.mxu0 %v2774_v39 }
 0x2aa   :  { %2684 = vmatprep.subr.bf16.mxu0 %v2775_v22 }
 0x2ad   :  { %2685 = vmatpush3.bf16.msra.mxu0 %v2775_v22 }
 0x2ae   :  { %2686 = vmatprep.subr.bf16.mxu0 %v2776_v54 }
 0x2b1   :  { %2687 = vmatpush3.bf16.msra.mxu0 %v2776_v54 }
 0x2b2   :  { %2688 = vmatprep.subr.bf16.mxu0 %v2777_v27 }
 0x2b5   :  { %2689 = vmatpush3.bf16.msra.mxu0 %v2777_v27 }
 0x325   :  { %v2644_v49 = vpop.f32.mrb[16].mxu1 }
 0x326   :  { %v3696_v4 = vadd.f32 %v2644_v49, %v3693_v6  ;;  %v1150_v43 = vpop.f32.mrb[17].mxu1 }
 0x327   :  { %v3699_v26 = vadd.f32 %v3693_v6, %v1150_v43  ;;  %v2645_v56 = vpop.f32.mrb[18].mxu1 }
 0x328   :  { %v1279_v40 = vmul.f32 %v3696_v4, %v3696_v4  ;;  %v3704_v16 = vadd.f32 %v2645_v56, %v3693_v6  ;;  %v1153_v11 = vpop.f32.mrb[19].mxu1 }
 0x329   :  { %v1277_v33 = vmul.f32 %v3699_v26, %v3699_v26  ;;  %v3709_v10 = vadd.f32 %v3693_v6, %v1153_v11 }
 0x32a   :  { %v1311_v47 = vmul.f32 %v1279_v40, %v3696_v4  ;;  %v1280_v8 = vmul.f32 %v3704_v16, %v3704_v16 }
 0x32b   :  { %v1309_v57 = vmul.f32 %v1277_v33, %v3699_v26  ;;  %v1278_v36 = vmul.f32 %v3709_v10, %v3709_v10 }
 0x32c   :  { %v1343_v2 = vmul.f32 0.044715, %v1311_v47  ;;  %v1312_v50 = vmul.f32 %v1280_v8, %v3704_v16 }
 0x32d   :  { %v1341_v29 = vmul.f32 0.044715, %v1309_v57  ;;  %v1310_v32 = vmul.f32 %v1278_v36, %v3709_v10 }
 0x32e   :  { %v1375_v21 = vadd.f32 %v1343_v2, %v3696_v4  ;;  %v1344_v0 = vmul.f32 0.044715, %v1312_v50 }
 0x32f   :  { %v1373_v52 = vadd.f32 %v1341_v29, %v3699_v26  ;;  %v1342_v45 = vmul.f32 0.044715, %v1310_v32 }
 0x330   :  { %v1407_v48 = vmul.f32 0.7978846, %v1375_v21  ;;  %v1376_v20 = vadd.f32 %v1344_v0, %v3704_v16 }
 0x331   :  { %v1405_v30 = vmul.f32 0.7978846, %v1373_v52  ;;  %v1374_v34 = vadd.f32 %v1342_v45, %v3709_v10 }
 0x332   :  { %2906 = vtanh.f32 %v1407_v48  ;;  %v1408_v17 = vmul.f32 0.7978846, %v1376_v20 }
 0x333   :  { %2908 = vtanh.f32 %v1405_v30  ;;  %v1406_v55 = vmul.f32 0.7978846, %v1374_v34 }
 0x334   :  { %2910 = vtanh.f32 %v1408_v17 }
 0x335   :  { %2912 = vtanh.f32 %v1406_v55 }
 0x337   :  { %v2648_v14 = vpop.f32.mrb[20].mxu1 }
 0x338   :  { %v3724_v37 = vadd.f32 %v2648_v14, %v3693_v6  ;;  %v1166_v25 = vpop.f32.mrb[21].mxu1 }
 0x339   :  { %v3727_v35 = vadd.f32 %v3693_v6, %v1166_v25  ;;  %v2649_v12 = vpop.f32.mrb[22].mxu1 }
 0x33a   :  { %v1283_v9 = vmul.f32 %v3724_v37, %v3724_v37  ;;  %v3732_v59 = vadd.f32 %v2649_v12, %v3693_v6  ;;  %v1169_v44 = vpop.f32.mrb[23].mxu1 }
 0x33b   :  { %v1281_v7 = vmul.f32 %v3727_v35, %v3727_v35  ;;  %v3737_v3 = vadd.f32 %v3693_v6, %v1169_v44 }
 0x33c   :  { %v2907_v41 = vpop.eup %2906  ;;  %v1315_v42 = vmul.f32 %v1283_v9, %v3724_v37  ;;  %v1284_v5 = vmul.f32 %v3732_v59, %v3732_v59 }
 0x33d   :  { %v2909_v63 = vpop.eup %2908  ;;  %v1471_v13 = vadd.f32 1.0, %v2907_v41  ;;  %v1313_v61 = vmul.f32 %v1281_v7, %v3727_v35  ;;  %v1282_v23 = vmul.f32 %v3737_v3, %v3737_v3 }
 0x33e   :  { %v2911_v38 = vpop.eup %2910  ;;  %v1347_v60 = vmul.f32 0.044715, %v1315_v42  ;;  %v1316_v62 = vmul.f32 %v1284_v5, %v3732_v59  ;;  %v1469_v18 = vadd.f32 1.0, %v2909_v63 }
 0x33f   :  { %v2913_v51 = vpop.eup %2912  ;;  %v1503_v28 = vmul.f32 0.5, %v1471_v13  ;;  %v1472_v53 = vadd.f32 1.0, %v2911_v38  ;;  %v1345_v1 = vmul.f32 0.044715, %v1313_v61  ;;  %v1314_v58 = vmul.f32 %v1282_v23, %v3737_v3 }
 0x340   :  { %v1379_v46 = vadd.f32 %v1347_v60, %v3724_v37  ;;  %v1348_v31 = vmul.f32 0.044715, %v1316_v62  ;;  %v1470_v15 = vadd.f32 1.0, %v2913_v51  ;;  %v1501_v24 = vmul.f32 0.5, %v1469_v18 }
 0x341   :  { %v1504_v19 = vmul.f32 0.5, %v1472_v53  ;;  %v1377_v39 = vadd.f32 %v1345_v1, %v3727_v35  ;;  %v1346_v22 = vmul.f32 0.044715, %v1314_v58  ;;  %v1535_v43 = vmul.f32 %v1503_v28, %v3696_v4 }
 0x342   :  { %v1411_v54 = vmul.f32 0.7978846, %v1379_v46  ;;  %v1380_v27 = vadd.f32 %v1348_v31, %v3732_v59  ;;  %v1502_v49 = vmul.f32 0.5, %v1470_v15  ;;  %v1533_v47 = vmul.f32 %v1501_v24, %v3699_v26 }
 0x343   :  { %v1536_v56 = vmul.f32 %v1504_v19, %v3704_v16  ;;  %v1409_v40 = vmul.f32 0.7978846, %v1377_v39  ;;  %v1378_v11 = vadd.f32 %v1346_v22, %v3737_v3 }
 0x344   :  { %2914 = vtanh.f32 %v1411_v54  ;;  %v1412_v33 = vmul.f32 0.7978846, %v1380_v27  ;;  %v1534_v8 = vmul.f32 %v1502_v49, %v3709_v10 }
 0x345   :  { %v1566_v57 = vpack.c.bf16 %v1536_v56, %v1535_v43  ;;  %2916 = vtanh.f32 %v1409_v40  ;;  %v1410_v36 = vmul.f32 0.7978846, %v1378_v11 }
 0x346   :  { %2918 = vtanh.f32 %v1412_v33  ;;  %v1565_v2 = vpack.c.bf16 %v1534_v8, %v1533_v47 }
 0x347   :  { %2920 = vtanh.f32 %v1410_v36 }
 0x348   :  { %v2652_v50 = vpop.f32.mrb[24].mxu1  ;;  %2690 = vmatprep.mubr.bf16.mxu0 %v1565_v2 }
 0x349   :  { %v3756_v4 = vadd.f32 %v2652_v50, %v3693_v6  ;;  %v1182_v16 = vpop.f32.mrb[25].mxu1  ;;  %2691 = vmatmul.mubr.bf16.vlgmr.msra.gmra.mrb[16].mxu0 %v1566_v57 }
 0x34a   :  { %v3759_v29 = vadd.f32 %v3693_v6, %v1182_v16  ;;  %v2653_v32 = vpop.f32.mrb[26].mxu1 }
 0x34b   :  { %v1287_v26 = vmul.f32 %v3756_v4, %v3756_v4  ;;  %v3764_v10 = vadd.f32 %v2653_v32, %v3693_v6  ;;  %v1185_v21 = vpop.f32.mrb[27].mxu1 }
 0x34c   :  { %v1285_v0 = vmul.f32 %v3759_v29, %v3759_v29  ;;  %v3769_v52 = vadd.f32 %v3693_v6, %v1185_v21 }
 0x34d   :  { %v1319_v45 = vmul.f32 %v1287_v26, %v3756_v4  ;;  %v1288_v48 = vmul.f32 %v3764_v10, %v3764_v10 }
 0x34e   :  { %v2915_v20 = vpop.eup %2914  ;;  %v1317_v30 = vmul.f32 %v1285_v0, %v3759_v29  ;;  %v1286_v34 = vmul.f32 %v3769_v52, %v3769_v52 }
 0x34f   :  { %v2917_v17 = vpop.eup %2916  ;;  %v1351_v55 = vmul.f32 0.044715, %v1319_v45  ;;  %v1320_v14 = vmul.f32 %v1288_v48, %v3764_v10  ;;  %v1475_v25 = vadd.f32 1.0, %v2915_v20 }
 0x350   :  { %v2919_v12 = vpop.eup %2918  ;;  %v1349_v9 = vmul.f32 0.044715, %v1317_v30  ;;  %v1318_v44 = vmul.f32 %v1286_v34, %v3769_v52  ;;  %v1473_v7 = vadd.f32 1.0, %v2917_v17 }
 0x351   :  { %v2921_v41 = vpop.eup %2920  ;;  %v1383_v42 = vadd.f32 %v1351_v55, %v3756_v4  ;;  %v1352_v5 = vmul.f32 0.044715, %v1320_v14  ;;  %v2656_v63 = vpop.f32.mrb[28].mxu1  ;;  %v1476_v13 = vadd.f32 1.0, %v2919_v12  ;;  %v1507_v61 = vmul.f32 0.5, %v1475_v25 }
 0x352   :  { %v1381_v23 = vadd.f32 %v1349_v9, %v3759_v29  ;;  %v1350_v38 = vmul.f32 0.044715, %v1318_v44  ;;  %v3782_v60 = vadd.f32 %v2656_v63, %v3693_v6  ;;  %v1198_v62 = vpop.f32.mrb[29].mxu1  ;;  %v1474_v18 = vadd.f32 1.0, %v2921_v41 }
 0x353   :  { %v1415_v51 = vmul.f32 0.7978846, %v1383_v42  ;;  %v1384_v28 = vadd.f32 %v1352_v5, %v3764_v10  ;;  %v3786_v53 = vadd.f32 %v3693_v6, %v1198_v62  ;;  %v2657_v1 = vpop.f32.mrb[30].mxu1  ;;  %v1505_v58 = vmul.f32 0.5, %v1473_v7 }
 0x354   :  { %v1413_v46 = vmul.f32 0.7978846, %v1381_v23  ;;  %v1382_v31 = vadd.f32 %v1350_v38, %v3769_v52  ;;  %v1291_v15 = vmul.f32 %v3782_v60, %v3782_v60  ;;  %v3792_v24 = vadd.f32 %v2657_v1, %v3693_v6  ;;  %v1201_v19 = vpop.f32.mrb[31].mxu1 }
 0x355   :  { %2922 = vtanh.f32 %v1415_v51  ;;  %v1416_v39 = vmul.f32 0.7978846, %v1384_v28  ;;  %v1289_v22 = vmul.f32 %v3786_v53, %v3786_v53  ;;  %v3797_v54 = vadd.f32 %v3693_v6, %v1201_v19 }
 0x356   :  { %2924 = vtanh.f32 %v1413_v46  ;;  %v1414_v27 = vmul.f32 0.7978846, %v1382_v31  ;;  %v1323_v49 = vmul.f32 %v1291_v15, %v3782_v60  ;;  %v1292_v43 = vmul.f32 %v3792_v24, %v3792_v24 }
 0x357   :  { %2926 = vtanh.f32 %v1416_v39  ;;  %v1321_v56 = vmul.f32 %v1289_v22, %v3786_v53  ;;  %v1290_v40 = vmul.f32 %v3797_v54, %v3797_v54  ;;  %v1506_v11 = vmul.f32 0.5, %v1474_v18 }
 0x358   :  { %2928 = vtanh.f32 %v1414_v27  ;;  %v1355_v33 = vmul.f32 0.044715, %v1323_v49  ;;  %v1324_v47 = vmul.f32 %v1292_v43, %v3792_v24  ;;  %v1537_v8 = vmul.f32 %v1505_v58, %v3727_v35 }
 0x359   :  { %v1353_v57 = vmul.f32 0.044715, %v1321_v56  ;;  %v1322_v36 = vmul.f32 %v1290_v40, %v3797_v54  ;;  %v1538_v2 = vmul.f32 %v1506_v11, %v3737_v3  ;;  %v1508_v50 = vmul.f32 0.5, %v1476_v13 }
 0x35a   :  { %v1387_v16 = vadd.f32 %v1355_v33, %v3782_v60  ;;  %v1356_v32 = vmul.f32 0.044715, %v1324_v47  ;;  %v2660_v26 = vpop.f32.mrb[32].mxu1  ;;  %v1539_v21 = vmul.f32 %v1507_v61, %v3724_v37 }
 0x35b   :  { %v1385_v0 = vadd.f32 %v1353_v57, %v3786_v53  ;;  %v1354_v45 = vmul.f32 0.044715, %v1322_v36  ;;  %v3813_v48 = vadd.f32 %v2660_v26, %v3693_v6  ;;  %v1214_v20 = vpop.f32.mrb[33].mxu1  ;;  %v1567_v35 = vpack.c.bf16 %v1538_v2, %v1537_v8 }
 0x35c   :  { %v1419_v30 = vmul.f32 0.7978846, %v1387_v16  ;;  %v1388_v34 = vadd.f32 %v1356_v32, %v3792_v24  ;;  %v3817_v3 = vadd.f32 %v3693_v6, %v1214_v20  ;;  %v2661_v17 = vpop.f32.mrb[34].mxu1  ;;  %v1540_v55 = vmul.f32 %v1508_v50, %v3732_v59 }
 0x35d   :  { %v1417_v14 = vmul.f32 0.7978846, %v1385_v0  ;;  %v1386_v37 = vadd.f32 %v1354_v45, %v3797_v54  ;;  %v1295_v25 = vmul.f32 %v3813_v48, %v3813_v48  ;;  %v3824_v12 = vadd.f32 %v2661_v17, %v3693_v6  ;;  %v1217_v9 = vpop.f32.mrb[35].mxu1  ;;  %2694 = vmatprep.mubr.bf16.mxu0 %v1567_v35 }
 0x35e   :  { %2930 = vtanh.f32 %v1419_v30  ;;  %v1420_v44 = vmul.f32 0.7978846, %v1388_v34  ;;  %v1293_v7 = vmul.f32 %v3817_v3, %v3817_v3  ;;  %v3829_v41 = vadd.f32 %v3693_v6, %v1217_v9 }
 0x35f   :  { %v2923_v59 = vpop.eup %2922  ;;  %2932 = vtanh.f32 %v1417_v14  ;;  %v1418_v42 = vmul.f32 0.7978846, %v1386_v37  ;;  %v1327_v5 = vmul.f32 %v1295_v25, %v3813_v48  ;;  %v1296_v63 = vmul.f32 %v3824_v12, %v3824_v12 }
 0x360   :  { %v2925_v13 = vpop.eup %2924  ;;  %2934 = vtanh.f32 %v1420_v44  ;;  %v1325_v61 = vmul.f32 %v1293_v7, %v3817_v3  ;;  %v1294_v23 = vmul.f32 %v3829_v41, %v3829_v41  ;;  %v1568_v38 = vpack.c.bf16 %v1540_v55, %v1539_v21 }
 0x361   :  { %v2927_v62 = vpop.eup %2926  ;;  %2936 = vtanh.f32 %v1418_v42  ;;  %v1359_v18 = vmul.f32 0.044715, %v1327_v5  ;;  %v1328_v51 = vmul.f32 %v1296_v63, %v3824_v12  ;;  %v1477_v28 = vadd.f32 1.0, %v2925_v13 }
 0x362   :  { %v2929_v1 = vpop.eup %2928  ;;  %v1357_v58 = vmul.f32 0.044715, %v1325_v61  ;;  %v1326_v46 = vmul.f32 %v1294_v23, %v3829_v41  ;;  %v2664_v31 = vpop.f32.mrb[36].mxu1  ;;  %2695 = vmatmul.mubr.bf16.gmra.mrb[20].mxu0 %v1568_v38  ;;  %v1479_v15 = vadd.f32 1.0, %v2923_v59  ;;  %v1480_v19 = vadd.f32 1.0, %v2927_v62 }
 0x363   :  { %v1391_v39 = vadd.f32 %v1359_v18, %v3813_v48  ;;  %v1360_v22 = vmul.f32 0.044715, %v1328_v51  ;;  %v3841_v27 = vadd.f32 %v2664_v31, %v3693_v6  ;;  %v1230_v49 = vpop.f32.mrb[37].mxu1  ;;  %v1478_v43 = vadd.f32 1.0, %v2929_v1 }
 0x364   :  { %v1389_v56 = vadd.f32 %v1357_v58, %v3817_v3  ;;  %v1358_v40 = vmul.f32 0.044715, %v1326_v46  ;;  %v3845_v11 = vadd.f32 %v3693_v6, %v1230_v49  ;;  %v2665_v33 = vpop.f32.mrb[38].mxu1  ;;  %v1509_v47 = vmul.f32 0.5, %v1477_v28 }
 0x365   :  { %v1423_v8 = vmul.f32 0.7978846, %v1391_v39  ;;  %v1392_v57 = vadd.f32 %v1360_v22, %v3824_v12  ;;  %v1299_v36 = vmul.f32 %v3841_v27, %v3841_v27  ;;  %v3851_v2 = vadd.f32 %v2665_v33, %v3693_v6  ;;  %v1233_v50 = vpop.f32.mrb[39].mxu1 }
 0x366   :  { %v1421_v16 = vmul.f32 0.7978846, %v1389_v56  ;;  %v1390_v32 = vadd.f32 %v1358_v40, %v3829_v41  ;;  %v1297_v26 = vmul.f32 %v3845_v11, %v3845_v11  ;;  %v3857_v21 = vadd.f32 %v3693_v6, %v1233_v50 }
 0x367   :  { %2938 = vtanh.f32 %v1423_v8  ;;  %v1424_v0 = vmul.f32 0.7978846, %v1392_v57  ;;  %v1331_v45 = vmul.f32 %v1299_v36, %v3841_v27  ;;  %v1300_v20 = vmul.f32 %v3851_v2, %v3851_v2 }
 0x368   :  { %v2931_v35 = vpop.eup %2930  ;;  %2940 = vtanh.f32 %v1421_v16  ;;  %v1422_v30 = vmul.f32 0.7978846, %v1390_v32  ;;  %v1329_v34 = vmul.f32 %v1297_v26, %v3845_v11  ;;  %v1298_v17 = vmul.f32 %v3857_v21, %v3857_v21 }
 0x369   :  { %v2933_v55 = vpop.eup %2932  ;;  %2942 = vtanh.f32 %v1424_v0  ;;  %v1363_v14 = vmul.f32 0.044715, %v1331_v45  ;;  %v1332_v37 = vmul.f32 %v1300_v20, %v3851_v2  ;;  %v1510_v25 = vmul.f32 0.5, %v1478_v43 }
 0x36a   :  { %v2935_v9 = vpop.eup %2934  ;;  %2944 = vtanh.f32 %v1422_v30  ;;  %v1361_v44 = vmul.f32 0.044715, %v1329_v34  ;;  %v1330_v7 = vmul.f32 %v1298_v17, %v3857_v21  ;;  %v1541_v59 = vmul.f32 %v1509_v47, %v3759_v29 }
 0x36b   :  { %v2937_v42 = vpop.eup %2936  ;;  %v1395_v5 = vadd.f32 %v1363_v14, %v3841_v27  ;;  %v1364_v63 = vmul.f32 0.044715, %v1332_v37  ;;  %v1542_v13 = vmul.f32 %v1510_v25, %v3769_v52  ;;  %v1511_v61 = vmul.f32 0.5, %v1479_v15 }
 0x36c   :  { %v1393_v23 = vadd.f32 %v1361_v44, %v3845_v11  ;;  %v1362_v38 = vmul.f32 0.044715, %v1330_v7  ;;  %v1512_v62 = vmul.f32 0.5, %v1480_v19  ;;  %v1481_v18 = vadd.f32 1.0, %v2933_v55 }
 0x36d   :  { %v1427_v51 = vmul.f32 0.7978846, %v1395_v5  ;;  %v1396_v28 = vadd.f32 %v1364_v63, %v3851_v2  ;;  %v2668_v1 = vpop.f32.mrb[40].mxu1  ;;  %v1569_v58 = vpack.c.bf16 %v1542_v13, %v1541_v59  ;;  %v1543_v46 = vmul.f32 %v1511_v61, %v3756_v4 }
 0x36e   :  { %v1425_v29 = vmul.f32 0.7978846, %v1393_v23  ;;  %v1394_v31 = vadd.f32 %v1362_v38, %v3857_v21  ;;  %v3875_v39 = vadd.f32 %v2668_v1, %v3693_v6  ;;  %v1246_v52 = vpop.f32.mrb[41].mxu1  ;;  %v1544_v15 = vmul.f32 %v1512_v62, %v3764_v10 }
 0x36f   :  { %2946 = vtanh.f32 %v1427_v51  ;;  %v1428_v22 = vmul.f32 0.7978846, %v1396_v28  ;;  %v3879_v19 = vadd.f32 %v3693_v6, %v1246_v52  ;;  %v2669_v49 = vpop.f32.mrb[42].mxu1  ;;  %2698 = vmatprep.mubr.bf16.mxu0 %v1569_v58  ;;  %v1482_v43 = vadd.f32 1.0, %v2937_v42 }
 0x370   :  { %2948 = vtanh.f32 %v1425_v29  ;;  %v1426_v56 = vmul.f32 0.7978846, %v1394_v31  ;;  %v1303_v4 = vmul.f32 %v3875_v39, %v3875_v39  ;;  %v3884_v40 = vadd.f32 %v2669_v49, %v3693_v6  ;;  %v1249_v33 = vpop.f32.mrb[43].mxu1 }
 0x371   :  { %v3886_v47 = vpop.eup %2938  ;;  %2950 = vtanh.f32 %v1428_v22  ;;  %v1301_v10 = vmul.f32 %v3879_v19, %v3879_v19  ;;  %v3891_v8 = vadd.f32 %v3693_v6, %v1249_v33  ;;  %v1570_v57 = vpack.c.bf16 %v1544_v15, %v1543_v46 }
 0x372   :  { %v2941_v36 = vpop.eup %2940  ;;  %2952 = vtanh.f32 %v1426_v56  ;;  %v1335_v50 = vmul.f32 %v1303_v4, %v3875_v39  ;;  %v1304_v16 = vmul.f32 %v3884_v40, %v3884_v40  ;;  %v1513_v32 = vmul.f32 0.5, %v1481_v18 }
 0x373   :  { %v3896_v26 = vpop.eup %2942  ;;  %v1333_v0 = vmul.f32 %v1301_v10, %v3879_v19  ;;  %v1302_v45 = vmul.f32 %v3891_v8, %v3891_v8  ;;  %2699 = vmatmul.mubr.bf16.gmra.mrb[24].mxu0 %v1570_v57  ;;  %v1514_v20 = vmul.f32 0.5, %v1482_v43  ;;  %v1483_v30 = vadd.f32 1.0, %v2931_v35 }
 0x374   :  { %v2945_v34 = vpop.eup %2944  ;;  %v1367_v17 = vmul.f32 0.044715, %v1335_v50  ;;  %v1336_v55 = vmul.f32 %v1304_v16, %v3884_v40  ;;  %v1545_v14 = vmul.f32 %v1513_v32, %v3786_v53  ;;  %v1484_v37 = vadd.f32 1.0, %v2935_v9 }
 0x375   :  { %v1365_v25 = vmul.f32 0.044715, %v1333_v0  ;;  %v1334_v44 = vmul.f32 %v1302_v45, %v3891_v8  ;;  %v1546_v7 = vmul.f32 %v1514_v20, %v3797_v54  ;;  %v1515_v59 = vmul.f32 0.5, %v1483_v30 }
 0x376   :  { %v1399_v42 = vadd.f32 %v1367_v17, %v3875_v39  ;;  %v1368_v5 = vmul.f32 0.044715, %v1336_v55  ;;  %v1516_v63 = vmul.f32 0.5, %v1484_v37  ;;  %v1485_v13 = vadd.f32 1.0, %v2941_v36 }
 0x377   :  { %v1397_v35 = vadd.f32 %v1365_v25, %v3879_v19  ;;  %v1366_v61 = vmul.f32 0.044715, %v1334_v44  ;;  %v2672_v23 = vpop.f32.mrb[44].mxu1  ;;  %v1571_v38 = vpack.c.bf16 %v1546_v7, %v1545_v14  ;;  %v1547_v62 = vmul.f32 %v1515_v59, %v3782_v60 }
 0x378   :  { %v1431_v53 = vmul.f32 0.7978846, %v1399_v42  ;;  %v1400_v9 = vadd.f32 %v1368_v5, %v3884_v40  ;;  %v3910_v18 = vadd.f32 %v2672_v23, %v3693_v6  ;;  %v1262_v54 = vpop.f32.mrb[45].mxu1  ;;  %v1548_v51 = vmul.f32 %v1516_v63, %v3792_v24 }
 0x379   :  { %v2947_v28 = vpop.eup %2946  ;;  %v1429_v1 = vmul.f32 0.7978846, %v1397_v35  ;;  %v1398_v58 = vadd.f32 %v1366_v61, %v3891_v8  ;;  %v3915_v46 = vadd.f32 %v3693_v6, %v1262_v54  ;;  %v2673_v29 = vpop.f32.mrb[46].mxu1  ;;  %2702 = vmatprep.mubr.bf16.mxu0 %v1571_v38  ;;  %v1486_v31 = vadd.f32 1.0, %v2945_v34 }
 0x37a   :  { %v2949_v60 = vpop.eup %2948  ;;  %2954 = vtanh.f32 %v1431_v53  ;;  %v1432_v52 = vmul.f32 0.7978846, %v1400_v9  ;;  %v1307_v15 = vmul.f32 %v3910_v18, %v3910_v18  ;;  %v3920_v22 = vadd.f32 %v2673_v29, %v3693_v6  ;;  %v1265_v24 = vpop.f32.mrb[47].mxu1 }
 0x37b   :  { %v2951_v49 = vpop.eup %2950  ;;  %2956 = vtanh.f32 %v1429_v1  ;;  %v1430_v43 = vmul.f32 0.7978846, %v1398_v58  ;;  %v1305_v56 = vmul.f32 %v3915_v46, %v3915_v46  ;;  %v3925_v4 = vadd.f32 %v3693_v6, %v1265_v24 }
 0x37c   :  { %v2953_v33 = vpop.eup %2952  ;;  %2958 = vtanh.f32 %v1432_v52  ;;  %v1339_v10 = vmul.f32 %v1307_v15, %v3910_v18  ;;  %v1308_v57 = vmul.f32 %v3920_v22, %v3920_v22  ;;  %v1572_v36 = vpack.c.bf16 %v1548_v51, %v1547_v62 }
 0x37d   :  { %2960 = vtanh.f32 %v1430_v43  ;;  %v1337_v50 = vmul.f32 %v1305_v56, %v3915_v46  ;;  %v1306_v16 = vmul.f32 %v3925_v4, %v3925_v4  ;;  %v1517_v32 = vmul.f32 0.5, %v1485_v13 }
 0x37e   :  { %v1371_v0 = vmul.f32 0.044715, %v1339_v10  ;;  %v1340_v45 = vmul.f32 %v1308_v57, %v3920_v22  ;;  %2703 = vmatmul.mubr.bf16.gmra.mrb[28].mxu0 %v1572_v36  ;;  %v1518_v6 = vmul.f32 0.5, %v1486_v31  ;;  %v1487_v20 = vadd.f32 1.0, %v3886_v47 }
 0x37f   :  { %v1369_v30 = vmul.f32 0.044715, %v1337_v50  ;;  %v1338_v34 = vmul.f32 %v1306_v16, %v3925_v4  ;;  %v1549_v17 = vmul.f32 %v1517_v32, %v3817_v3  ;;  %v1488_v55 = vadd.f32 1.0, %v3896_v26 }
 0x380   :  { %v1403_v14 = vadd.f32 %v1371_v0, %v3910_v18  ;;  %v1372_v37 = vmul.f32 0.044715, %v1340_v45  ;;  %v1550_v25 = vmul.f32 %v1518_v6, %v3829_v41  ;;  %v1519_v44 = vmul.f32 0.5, %v1487_v20 }
 0x381   :  { %v1401_v7 = vadd.f32 %v1369_v30, %v3915_v46  ;;  %v1370_v59 = vmul.f32 0.044715, %v1338_v34  ;;  %v1520_v42 = vmul.f32 0.5, %v1488_v55  ;;  %v1489_v5 = vadd.f32 1.0, %v2949_v60 }
 0x382   :  { %v1435_v63 = vmul.f32 0.7978846, %v1403_v14  ;;  %v1404_v47 = vadd.f32 %v1372_v37, %v3920_v22  ;;  %v1573_v13 = vpack.c.bf16 %v1550_v25, %v1549_v17  ;;  %v1551_v35 = vmul.f32 %v1519_v44, %v3813_v48 }
 0x383   :  { %v1433_v3 = vmul.f32 0.7978846, %v1401_v7  ;;  %v1402_v26 = vadd.f32 %v1370_v59, %v3925_v4  ;;  %v1552_v61 = vmul.f32 %v1520_v42, %v3824_v12  ;;  %v1490_v23 = vadd.f32 1.0, %v2953_v33 }
 0x384   :  { %v2955_v38 = vpop.eup %2954  ;;  %2962 = vtanh.f32 %v1435_v63  ;;  %v1436_v41 = vmul.f32 0.7978846, %v1404_v47  ;;  %2706 = vmatprep.mubr.bf16.mxu0 %v1573_v13  ;;  %v1521_v62 = vmul.f32 0.5, %v1489_v5  ;;  %v1491_v53 = vadd.f32 1.0, %v2947_v28  ;;  %v3960_v5 = vld [vmem:[%s4770_s6] ss:$0 sm:$0xff] }
 0x385   :  { %v2957_v9 = vpop.eup %2956  ;;  %2964 = vtanh.f32 %v1433_v3  ;;  %v1434_v54 = vmul.f32 0.7978846, %v1402_v26  ;;  %v1574_v51 = vpack.c.bf16 %v1552_v61, %v1551_v35  ;;  %v1522_v1 = vmul.f32 0.5, %v1490_v23 }
 0x386   :  { %v2959_v58 = vpop.eup %2958  ;;  %2966 = vtanh.f32 %v1436_v41  ;;  %v1553_v48 = vmul.f32 %v1521_v62, %v3845_v11  ;;  %v1492_v29 = vadd.f32 1.0, %v2951_v49  ;;  %v1523_v31 = vmul.f32 0.5, %v1491_v53 }
 0x387   :  { %v2961_v60 = vpop.eup %2960  ;;  %2968 = vtanh.f32 %v1434_v54  ;;  %2707 = vmatmul.mubr.bf16.gmra.mrb[32].mxu0 %v1574_v51  ;;  %v1554_v12 = vmul.f32 %v1522_v1, %v3857_v21  ;;  %v1493_v52 = vadd.f32 1.0, %v2957_v9  ;;  %v1495_v15 = vadd.f32 1.0, %v2955_v38 }
 0x388   :  { %v1524_v24 = vmul.f32 0.5, %v1492_v29  ;;  %v1494_v28 = vadd.f32 1.0, %v2961_v60  ;;  %v1496_v43 = vadd.f32 1.0, %v2959_v58  ;;  %v1555_v57 = vmul.f32 %v1523_v31, %v3841_v27 }
 0x389   :  { %v1575_v56 = vpack.c.bf16 %v1554_v12, %v1553_v48  ;;  %v1525_v33 = vmul.f32 0.5, %v1493_v52  ;;  %v1527_v10 = vmul.f32 0.5, %v1495_v15 }
 0x38a   :  { %v1556_v36 = vmul.f32 %v1524_v24, %v3851_v2  ;;  %v1526_v11 = vmul.f32 0.5, %v1494_v28  ;;  %v1528_v49 = vmul.f32 0.5, %v1496_v43 }
 0x38b   :  { %2710 = vmatprep.mubr.bf16.mxu0 %v1575_v56  ;;  %v1557_v50 = vmul.f32 %v1525_v33, %v3879_v19  ;;  %v1559_v32 = vmul.f32 %v1527_v10, %v3875_v39 }
 0x38c   :  { %v1576_v16 = vpack.c.bf16 %v1556_v36, %v1555_v57  ;;  %v1558_v21 = vmul.f32 %v1526_v11, %v3891_v8  ;;  %v1560_v0 = vmul.f32 %v1528_v49, %v3884_v40 }
 0x38e   :  { %v2963_v45 = vpop.eup %2962  ;;  %v1577_v6 = vpack.c.bf16 %v1558_v21, %v1557_v50  ;;  %v1578_v20 = vpack.c.bf16 %v1560_v0, %v1559_v32 }
 0x38f   :  { %v2965_v30 = vpop.eup %2964  ;;  %2711 = vmatmul.mubr.bf16.gmra.mrb[36].mxu0 %v1576_v16  ;;  %v1499_v27 = vadd.f32 1.0, %v2963_v45 }
 0x390   :  { %v2967_v34 = vpop.eup %2966  ;;  %2714 = vmatprep.mubr.bf16.mxu0 %v1577_v6  ;;  %v1497_v2 = vadd.f32 1.0, %v2965_v30 }
 0x391   :  { %v2969_v17 = vpop.eup %2968  ;;  %v1500_v55 = vadd.f32 1.0, %v2967_v34  ;;  %v1531_v14 = vmul.f32 0.5, %v1499_v27 }
 0x392   :  { %v1498_v19 = vadd.f32 1.0, %v2969_v17  ;;  %v1529_v37 = vmul.f32 0.5, %v1497_v2 }
 0x393   :  { %v1532_v25 = vmul.f32 0.5, %v1500_v55  ;;  %v1563_v39 = vmul.f32 %v1531_v14, %v3910_v18 }
 0x394   :  { %v1530_v8 = vmul.f32 0.5, %v1498_v19  ;;  %v1561_v44 = vmul.f32 %v1529_v37, %v3915_v46 }
 0x395   :  { %v1564_v40 = vmul.f32 %v1532_v25, %v3920_v22 }
 0x396   :  { %v1562_v7 = vmul.f32 %v1530_v8, %v3925_v4 }
 0x397   :  { %2715 = vmatmul.mubr.bf16.gmra.mrb[40].mxu0 %v1578_v20  ;;  %v1580_v59 = vpack.c.bf16 %v1564_v40, %v1563_v39 }
 0x398   :  { %v1579_v42 = vpack.c.bf16 %v1562_v7, %v1561_v44 }
 0x39a   :  { %2718 = vmatprep.mubr.bf16.mxu0 %v1579_v42 }
 0x39f   :  { %2719 = vmatmul.mubr.bf16.gmra.mrb[44].mxu0 %v1580_v59 }
 0x41c   :  { %v2692_v63 = vpop.f32.mrb[16].mxu0 }
 0x41d   :  { %v3963_v47 = vadd.f32 %v2692_v63, %v3960_v5  ;;  %v1686_v18 = vpop.f32.mrb[17].mxu0 }
 0x41e   :  { %v3966_v22 = vadd.f32 %v3960_v5, %v1686_v18  ;;  %v2693_v46 = vpop.f32.mrb[18].mxu0 }
 0x41f   :  { %1815 = vst [vmem:[%s4771_s7 + $0x10] sm:$0xff] %v3963_v47  ;;  %v3973_v4 = vadd.f32 %v2693_v46, %v3960_v5  ;;  %1851 = vmax.xlane.f32.xlu0 %v3963_v47  ;;  %v1689_v13 = vpop.f32.mrb[19].mxu0 }
 0x420   :  { %1813 = vst [vmem:[%s4771_s7] sm:$0xff] %v3966_v22  ;;  %v3981_v35 = vadd.f32 %v3960_v5, %v1689_v13 }
 0x421   :  { %1816 = vst [vmem:[%s4771_s7 + $0x18] sm:$0xff] %v3973_v4  ;;  %1853 = vmax.xlane.f32.xlu1 %v3973_v4 }
 0x422   :  { %1814 = vst [vmem:[%s4771_s7 + $0x8] sm:$0xff] %v3981_v35 }
 0x423   :  { %1847 = vmax.xlane.f32.xlu0 %v3966_v22 }
 0x425   :  { %1849 = vmax.xlane.f32.xlu1 %v3981_v35 }
 0x435   :  { %v2696_v3 = vpop.f32.mrb[20].mxu0 }
 0x436   :  { %v3995_v26 = vadd.f32 %v2696_v3, %v3960_v5  ;;  %v1702_v61 = vpop.f32.mrb[21].mxu0 }
 0x437   :  { %v3998_v23 = vadd.f32 %v3960_v5, %v1702_v61  ;;  %v2697_v38 = vpop.f32.mrb[22].mxu0 }
 0x438   :  { %1819 = vst [vmem:[%s4771_s7 + $0x30] sm:$0xff] %v3995_v26  ;;  %v4005_v41 = vadd.f32 %v2697_v38, %v3960_v5  ;;  %1859 = vmax.xlane.f32.xlu0 %v3995_v26  ;;  %v1705_v62 = vpop.f32.mrb[23].mxu0 }
 0x439   :  { %1817 = vst [vmem:[%s4771_s7 + $0x20] sm:$0xff] %v3998_v23  ;;  %v4013_v53 = vadd.f32 %v3960_v5, %v1705_v62 }
 0x43a   :  { %1820 = vst [vmem:[%s4771_s7 + $0x38] sm:$0xff] %v4005_v41  ;;  %1861 = vmax.xlane.f32.xlu1 %v4005_v41 }
 0x43b   :  { %1818 = vst [vmem:[%s4771_s7 + $0x28] sm:$0xff] %v4013_v53 }
 0x43c   :  { %1855 = vmax.xlane.f32.xlu0 %v3998_v23 }
 0x43e   :  { %1857 = vmax.xlane.f32.xlu1 %v4013_v53 }
 0x446   :  { %v2700_v9 = vpop.f32.mrb[24].mxu0 }
 0x447   :  { %v4027_v54 = vadd.f32 %v2700_v9, %v3960_v5  ;;  %v1718_v51 = vpop.f32.mrb[25].mxu0 }
 0x448   :  { %v4030_v1 = vadd.f32 %v3960_v5, %v1718_v51  ;;  %v2701_v58 = vpop.f32.mrb[26].mxu0 }
 0x449   :  { %1823 = vst [vmem:[%s4771_s7 + $0x50] sm:$0xff] %v4027_v54  ;;  %v4037_v48 = vadd.f32 %v2701_v58, %v3960_v5  ;;  %1867 = vmax.xlane.f32.xlu0 %v4027_v54  ;;  %v1721_v29 = vpop.f32.mrb[27].mxu0 }
 0x44a   :  { %1821 = vst [vmem:[%s4771_s7 + $0x40] sm:$0xff] %v4030_v1  ;;  %v4045_v31 = vadd.f32 %v3960_v5, %v1721_v29 }
 0x44b   :  { %1824 = vst [vmem:[%s4771_s7 + $0x58] sm:$0xff] %v4037_v48  ;;  %1869 = vmax.xlane.f32.xlu1 %v4037_v48 }
 0x44c   :  { %1822 = vst [vmem:[%s4771_s7 + $0x48] sm:$0xff] %v4045_v31 }
 0x44d   :  { %1863 = vmax.xlane.f32.xlu0 %v4030_v1 }
 0x44f   :  { %1865 = vmax.xlane.f32.xlu1 %v4045_v31 }
 0x451   :  { %v2704_v60 = vpop.f32.mrb[28].mxu0 }
 0x452   :  { %v4059_v12 = vadd.f32 %v2704_v60, %v3960_v5  ;;  %v1734_v52 = vpop.f32.mrb[29].mxu0 }
 0x453   :  { %v4062_v15 = vadd.f32 %v3960_v5, %v1734_v52  ;;  %v2705_v24 = vpop.f32.mrb[30].mxu0 }
 0x454   :  { %1827 = vst [vmem:[%s4771_s7 + $0x70] sm:$0xff] %v4059_v12  ;;  %v4069_v28 = vadd.f32 %v2705_v24, %v3960_v5  ;;  %1875 = vmax.xlane.f32.xlu0 %v4059_v12  ;;  %v1737_v43 = vpop.f32.mrb[31].mxu0 }
 0x455   :  { %1825 = vst [vmem:[%s4771_s7 + $0x60] sm:$0xff] %v4062_v15  ;;  %v4077_v56 = vadd.f32 %v3960_v5, %v1737_v43 }
 0x456   :  { %1828 = vst [vmem:[%s4771_s7 + $0x78] sm:$0xff] %v4069_v28  ;;  %1877 = vmax.xlane.f32.xlu1 %v4069_v28 }
 0x457   :  { %1826 = vst [vmem:[%s4771_s7 + $0x68] sm:$0xff] %v4077_v56 }
 0x458   :  { %1871 = vmax.xlane.f32.xlu0 %v4062_v15 }
 0x45a   :  { %v2708_v33 = vpop.f32.mrb[32].mxu0  ;;  %1873 = vmax.xlane.f32.xlu1 %v4077_v56 }
 0x45b   :  { %v4091_v10 = vadd.f32 %v2708_v33, %v3960_v5  ;;  %v1750_v57 = vpop.f32.mrb[33].mxu0 }
 0x45c   :  { %v4094_v36 = vadd.f32 %v3960_v5, %v1750_v57  ;;  %v2709_v11 = vpop.f32.mrb[34].mxu0 }
 0x45d   :  { %1831 = vst [vmem:[%s4771_s7 + $0x90] sm:$0xff] %v4091_v10  ;;  %v4101_v49 = vadd.f32 %v2709_v11, %v3960_v5  ;;  %1883 = vmax.xlane.f32.xlu0 %v4091_v10  ;;  %v1753_v50 = vpop.f32.mrb[35].mxu0 }
 0x45e   :  { %1829 = vst [vmem:[%s4771_s7 + $0x80] sm:$0xff] %v4094_v36  ;;  %v4109_v16 = vadd.f32 %v3960_v5, %v1753_v50 }
 0x45f   :  { %1832 = vst [vmem:[%s4771_s7 + $0x98] sm:$0xff] %v4101_v49  ;;  %1885 = vmax.xlane.f32.xlu1 %v4101_v49 }
 0x460   :  { %1830 = vst [vmem:[%s4771_s7 + $0x88] sm:$0xff] %v4109_v16 }
 0x461   :  { %1879 = vmax.xlane.f32.xlu0 %v4094_v36 }
 0x462   :  { %v2712_v21 = vpop.f32.mrb[36].mxu0 }
 0x463   :  { %v4122_v32 = vadd.f32 %v2712_v21, %v3960_v5  ;;  %1881 = vmax.xlane.f32.xlu1 %v4109_v16  ;;  %v1766_v0 = vpop.f32.mrb[37].mxu0 }
 0x464   :  { %v4126_v45 = vadd.f32 %v3960_v5, %v1766_v0  ;;  %v2713_v6 = vpop.f32.mrb[38].mxu0 }
 0x465   :  { %1835 = vst [vmem:[%s4771_s7 + $0xb0] sm:$0xff] %v4122_v32  ;;  %v4133_v20 = vadd.f32 %v2713_v6, %v3960_v5  ;;  %1891 = vmax.xlane.f32.xlu0 %v4122_v32  ;;  %v1769_v30 = vpop.f32.mrb[39].mxu0 }
 0x466   :  { %1833 = vst [vmem:[%s4771_s7 + $0xa0] sm:$0xff] %v4126_v45  ;;  %v4141_v27 = vadd.f32 %v3960_v5, %v1769_v30 }
 0x467   :  { %1836 = vst [vmem:[%s4771_s7 + $0xb8] sm:$0xff] %v4133_v20  ;;  %1893 = vmax.xlane.f32.xlu1 %v4133_v20 }
 0x468   :  { %1834 = vst [vmem:[%s4771_s7 + $0xa8] sm:$0xff] %v4141_v27 }
 0x469   :  { %1887 = vmax.xlane.f32.xlu0 %v4126_v45 }
 0x46a   :  { %v2716_v34 = vpop.f32.mrb[40].mxu0 }
 0x46b   :  { %v4154_v2 = vadd.f32 %v2716_v34, %v3960_v5  ;;  %1889 = vmax.xlane.f32.xlu1 %v4141_v27  ;;  %v1782_v17 = vpop.f32.mrb[41].mxu0 }
 0x46c   :  { %v4158_v55 = vadd.f32 %v3960_v5, %v1782_v17  ;;  %v2717_v14 = vpop.f32.mrb[42].mxu0 }
 0x46d   :  { %1839 = vst [vmem:[%s4771_s7 + $0xd0] sm:$0xff] %v4154_v2  ;;  %v4165_v19 = vadd.f32 %v2717_v14, %v3960_v5  ;;  %1899 = vmax.xlane.f32.xlu0 %v4154_v2  ;;  %v1785_v37 = vpop.f32.mrb[43].mxu0 }
 0x46e   :  { %1837 = vst [vmem:[%s4771_s7 + $0xc0] sm:$0xff] %v4158_v55  ;;  %v4173_v25 = vadd.f32 %v3960_v5, %v1785_v37 }
 0x46f   :  { %1840 = vst [vmem:[%s4771_s7 + $0xd8] sm:$0xff] %v4165_v19  ;;  %1901 = vmax.xlane.f32.xlu1 %v4165_v19 }
 0x470   :  { %1838 = vst [vmem:[%s4771_s7 + $0xc8] sm:$0xff] %v4173_v25 }
 0x471   :  { %1895 = vmax.xlane.f32.xlu0 %v4158_v55 }
 0x472   :  { %v2720_v8 = vpop.f32.mrb[44].mxu0 }
 0x473   :  { %v4186_v39 = vadd.f32 %v2720_v8, %v3960_v5  ;;  %1897 = vmax.xlane.f32.xlu1 %v4173_v25  ;;  %v1798_v40 = vpop.f32.mrb[45].mxu0 }
 0x474   :  { %v4190_v44 = vadd.f32 %v3960_v5, %v1798_v40  ;;  %v2721_v7 = vpop.f32.mrb[46].mxu0 }
 0x475   :  { %1843 = vst [vmem:[%s4771_s7 + $0xf0] sm:$0xff] %v4186_v39  ;;  %v4197_v59 = vadd.f32 %v2721_v7, %v3960_v5  ;;  %v1801_v42 = vpop.f32.mrb[47].mxu0 }
 0x476   :  { %1841 = vst [vmem:[%s4771_s7 + $0xe0] sm:$0xff] %v4190_v44  ;;  %v4204_v63 = vadd.f32 %v3960_v5, %v1801_v42  ;;  %1903 = vmax.xlane.f32.xlu0 %v4190_v44  ;;  %v1845_v5 = vlaneseq }
 0x477   :  { %1844 = vst [vmem:[%s4771_s7 + $0xf8] sm:$0xff] %v4197_v59 }
 0x478   :  { %1842 = vst [vmem:[%s4771_s7 + $0xe8] sm:$0xff] %v4204_v63  ;;  %1905 = vmax.xlane.f32.xlu1 %v4204_v63  ;;  %v4218_v18 = vand.u32 127, %v1845_v5 }
 0x47a   :  { %1907 = vmax.xlane.f32.xlu0 %v4186_v39 }
 0x47c   :  { %1909 = vmax.xlane.f32.xlu1 %v4197_v59 }
 0x4ac   :  { %v1852_v46 = vpop.xlane.xlu0 %1851 }
 0x4ad   :  { %vm1913_vm0 = vcmp.eq.f32.partialorder %v3963_v47, %v1852_v46 }
 0x4ae   :  { %v4222_v13 = vsel %vm1913_vm0, %v4218_v18, 128  ;;  %v1854_v3 = vpop.xlane.xlu1 %1853 }
 0x4af   :  { %vm1914_vm1 = vcmp.eq.f32.partialorder %v3973_v4, %v1854_v3  ;;  %v2004_v61 = vshra.s32 %v4222_v13, 16 }
 0x4b0   :  { %v4227_v38 = vsel %vm1914_vm1, %v4218_v18, 128  ;;  %v1848_v62 = vpop.xlane.xlu0 %1847 }
 0x4b1   :  { %vm1911_vm2 = vcmp.eq.f32.partialorder %v3966_v22, %v1848_v62  ;;  %v4230_v9 = vcvt.s32.f32 %v2004_v61  ;;  %v2018_v58 = vshra.s32 %v4227_v38, 16 }
 0x4b2   :  { %v4233_v51 = vsel %vm1911_vm2, %v4218_v18, 128  ;;  %v1850_v47 = vpop.xlane.xlu1 %1849 }
 0x4b3   :  { %v1976_v29 = vshra.s32 %v4233_v51, 16  ;;  %vm1912_vm3 = vcmp.eq.f32.partialorder %v3981_v35, %v1850_v47  ;;  %2007 = vmin.xlane.f32.xlu0 %v4230_v9  ;;  %v4242_v60 = vcvt.s32.f32 %v2018_v58 }
 0x4b4   :  { %v4240_v4 = vsel %vm1912_vm3, %v4218_v18, 128 }
 0x4b5   :  { %v4244_v22 = vcvt.s32.f32 %v1976_v29  ;;  %v1990_v52 = vshra.s32 %v4240_v4, 16  ;;  %2021 = vmin.xlane.f32.xlu1 %v4242_v60 }
 0x4b7   :  { %v4248_v24 = vcvt.s32.f32 %v1990_v52  ;;  %1979 = vmin.xlane.f32.xlu0 %v4244_v22 }
 0x4b9   :  { %1993 = vmin.xlane.f32.xlu1 %v4248_v24 }
 0x4c5   :  { %v1860_v35 = vpop.xlane.xlu0 %1859 }
 0x4c6   :  { %vm1917_vm4 = vcmp.eq.f32.partialorder %v3995_v26, %v1860_v35 }
 0x4c7   :  { %v4254_v43 = vsel %vm1917_vm4, %v4218_v18, 128  ;;  %v1862_v33 = vpop.xlane.xlu1 %1861 }
 0x4c8   :  { %v2060_v57 = vshra.s32 %v4254_v43, 16  ;;  %vm1918_vm5 = vcmp.eq.f32.partialorder %v4005_v41, %v1862_v33 }
 0x4c9   :  { %v4259_v11 = vsel %vm1918_vm5, %v4218_v18, 128  ;;  %v1856_v50 = vpop.xlane.xlu0 %1855 }
 0x4ca   :  { %v4261_v21 = vcvt.s32.f32 %v2060_v57  ;;  %v2074_v0 = vshra.s32 %v4259_v11, 16  ;;  %vm1915_vm6 = vcmp.eq.f32.partialorder %v3998_v23, %v1856_v50 }
 0x4cb   :  { %v1858_v6 = vpop.xlane.xlu1 %1857  ;;  %v4268_v30 = vsel %vm1915_vm6, %v4218_v18, 128 }
 0x4cc   :  { %v4265_v26 = vcvt.s32.f32 %v2074_v0  ;;  %vm1916_vm7 = vcmp.eq.f32.partialorder %v4013_v53, %v1858_v6  ;;  %2063 = vmin.xlane.f32.xlu0 %v4261_v21  ;;  %v2032_v41 = vshra.s32 %v4268_v30, 16 }
 0x4cd   :  { %v4274_v34 = vsel %vm1916_vm7, %v4218_v18, 128 }
 0x4ce   :  { %v2046_v17 = vshra.s32 %v4274_v34, 16  ;;  %2077 = vmin.xlane.f32.xlu1 %v4265_v26  ;;  %v4278_v23 = vcvt.s32.f32 %v2032_v41 }
 0x4d0   :  { %v4280_v14 = vcvt.s32.f32 %v2046_v17  ;;  %2035 = vmin.xlane.f32.xlu0 %v4278_v23 }
 0x4d2   :  { %2049 = vmin.xlane.f32.xlu1 %v4280_v14 }
 0x4d6   :  { %v1868_v53 = vpop.xlane.xlu0 %1867 }
 0x4d7   :  { %vm1921_vm8 = vcmp.eq.f32.partialorder %v4027_v54, %v1868_v53 }
 0x4d8   :  { %v4286_v37 = vsel %vm1921_vm8, %v4218_v18, 128  ;;  %v1870_v8 = vpop.xlane.xlu1 %1869 }
 0x4d9   :  { %v2116_v40 = vshra.s32 %v4286_v37, 16  ;;  %vm1922_vm9 = vcmp.eq.f32.partialorder %v4037_v48, %v1870_v8 }
 0x4da   :  { %v4291_v7 = vsel %vm1922_vm9, %v4218_v18, 128  ;;  %v1864_v42 = vpop.xlane.xlu0 %1863 }
 0x4db   :  { %v4293_v5 = vcvt.s32.f32 %v2116_v40  ;;  %v2130_v46 = vshra.s32 %v4291_v7, 16  ;;  %vm1919_vm10 = vcmp.eq.f32.partialorder %v4030_v1, %v1864_v42 }
 0x4dc   :  { %v1866_v3 = vpop.xlane.xlu1 %1865  ;;  %v4300_v61 = vsel %vm1919_vm10, %v4218_v18, 128 }
 0x4dd   :  { %v4297_v54 = vcvt.s32.f32 %v2130_v46  ;;  %vm1920_vm11 = vcmp.eq.f32.partialorder %v4045_v31, %v1866_v3  ;;  %2119 = vmin.xlane.f32.xlu0 %v4293_v5  ;;  %v2088_v48 = vshra.s32 %v4300_v61, 16 }
 0x4de   :  { %v4306_v62 = vsel %vm1920_vm11, %v4218_v18, 128 }
 0x4df   :  { %v2102_v47 = vshra.s32 %v4306_v62, 16  ;;  %2133 = vmin.xlane.f32.xlu1 %v4297_v54  ;;  %v4310_v1 = vcvt.s32.f32 %v2088_v48 }
 0x4e1   :  { %v4312_v58 = vcvt.s32.f32 %v2102_v47  ;;  %v1876_v29 = vpop.xlane.xlu0 %1875  ;;  %2091 = vmin.xlane.f32.xlu0 %v4310_v1 }
 0x4e2   :  { %vm1925_vm12 = vcmp.eq.f32.partialorder %v4059_v12, %v1876_v29 }
 0x4e3   :  { %v4317_v31 = vsel %vm1925_vm12, %v4218_v18, 128  ;;  %v1878_v52 = vpop.xlane.xlu1 %1877  ;;  %2105 = vmin.xlane.f32.xlu1 %v4312_v58 }
 0x4e4   :  { %v2172_v35 = vshra.s32 %v4317_v31, 16  ;;  %vm1926_vm13 = vcmp.eq.f32.partialorder %v4069_v28, %v1878_v52 }
 0x4e5   :  { %v4323_v33 = vsel %vm1926_vm13, %v4218_v18, 128  ;;  %v1872_v57 = vpop.xlane.xlu0 %1871 }
 0x4e6   :  { %v4325_v50 = vcvt.s32.f32 %v2172_v35  ;;  %v2186_v12 = vshra.s32 %v4323_v33, 16  ;;  %vm1923_vm14 = vcmp.eq.f32.partialorder %v4062_v15, %v1872_v57 }
 0x4e7   :  { %v1874_v0 = vpop.xlane.xlu1 %1873  ;;  %v4332_v41 = vsel %vm1923_vm14, %v4218_v18, 128 }
 0x4e8   :  { %v4329_v6 = vcvt.s32.f32 %v2186_v12  ;;  %vm1924_vm15 = vcmp.eq.f32.partialorder %v4077_v56, %v1874_v0  ;;  %2175 = vmin.xlane.f32.xlu0 %v4325_v50  ;;  %v2144_v28 = vshra.s32 %v4332_v41, 16 }
 0x4e9   :  { %v4338_v17 = vsel %vm1924_vm15, %v4218_v18, 128 }
 0x4ea   :  { %v2158_v53 = vshra.s32 %v4338_v17, 16  ;;  %v1884_v8 = vpop.xlane.xlu0 %1883  ;;  %2189 = vmin.xlane.f32.xlu1 %v4329_v6  ;;  %v4342_v15 = vcvt.s32.f32 %v2144_v28 }
 0x4eb   :  { %vm1929_vm0 = vcmp.eq.f32.partialorder %v4091_v10, %v1884_v8 }
 0x4ec   :  { %v4345_v40 = vcvt.s32.f32 %v2158_v53  ;;  %v4348_v56 = vsel %vm1929_vm0, %v4218_v18, 128  ;;  %v1886_v42 = vpop.xlane.xlu1 %1885  ;;  %2147 = vmin.xlane.f32.xlu0 %v4342_v15 }
 0x4ed   :  { %v2228_v46 = vshra.s32 %v4348_v56, 16  ;;  %vm1930_vm1 = vcmp.eq.f32.partialorder %v4101_v49, %v1886_v42 }
 0x4ee   :  { %v4354_v3 = vsel %vm1930_vm1, %v4218_v18, 128  ;;  %v1880_v48 = vpop.xlane.xlu0 %1879  ;;  %2161 = vmin.xlane.f32.xlu1 %v4345_v40 }
 0x4ef   :  { %v4357_v47 = vcvt.s32.f32 %v2228_v46  ;;  %v2242_v10 = vshra.s32 %v4354_v3, 16  ;;  %vm1927_vm2 = vcmp.eq.f32.partialorder %v4094_v36, %v1880_v48 }
 0x4f0   :  { %v1882_v29 = vpop.xlane.xlu1 %1881  ;;  %v4364_v35 = vsel %vm1927_vm2, %v4218_v18, 128 }
 0x4f1   :  { %v4361_v52 = vcvt.s32.f32 %v2242_v10  ;;  %vm1928_vm3 = vcmp.eq.f32.partialorder %v4109_v16, %v1882_v29  ;;  %2231 = vmin.xlane.f32.xlu0 %v4357_v47  ;;  %v2200_v49 = vshra.s32 %v4364_v35, 16 }
 0x4f2   :  { %v4370_v57 = vsel %vm1928_vm3, %v4218_v18, 128  ;;  %v1892_v12 = vpop.xlane.xlu0 %1891 }
 0x4f3   :  { %v2214_v0 = vshra.s32 %v4370_v57, 16  ;;  %vm1933_vm4 = vcmp.eq.f32.partialorder %v4122_v32, %v1892_v12  ;;  %2245 = vmin.xlane.f32.xlu1 %v4361_v52  ;;  %v4375_v36 = vcvt.s32.f32 %v2200_v49 }
 0x4f4   :  { %v4378_v28 = vsel %vm1933_vm4, %v4218_v18, 128  ;;  %v1894_v16 = vpop.xlane.xlu1 %1893 }
 0x4f5   :  { %v4380_v53 = vcvt.s32.f32 %v2214_v0  ;;  %v2284_v8 = vshra.s32 %v4378_v28, 16  ;;  %vm1934_vm5 = vcmp.eq.f32.partialorder %v4133_v20, %v1894_v16  ;;  %2203 = vmin.xlane.f32.xlu0 %v4375_v36 }
 0x4f6   :  { %v1888_v42 = vpop.xlane.xlu0 %1887  ;;  %v4388_v32 = vsel %vm1934_vm5, %v4218_v18, 128 }
 0x4f7   :  { %v4385_v46 = vcvt.s32.f32 %v2284_v8  ;;  %vm1931_vm6 = vcmp.eq.f32.partialorder %v4126_v45, %v1888_v42  ;;  %2217 = vmin.xlane.f32.xlu1 %v4380_v53  ;;  %v2298_v48 = vshra.s32 %v4388_v32, 16 }
 0x4f8   :  { %v4394_v10 = vsel %vm1931_vm6, %v4218_v18, 128  ;;  %v1890_v29 = vpop.xlane.xlu1 %1889 }
 0x4f9   :  { %v2256_v20 = vshra.s32 %v4394_v10, 16  ;;  %vm1932_vm7 = vcmp.eq.f32.partialorder %v4141_v27, %v1890_v29  ;;  %v4398_v49 = vcvt.s32.f32 %v2298_v48  ;;  %2287 = vmin.xlane.f32.xlu0 %v4385_v46 }
 0x4fa   :  { %v4401_v12 = vsel %vm1932_vm7, %v4218_v18, 128  ;;  %v1900_v45 = vpop.xlane.xlu0 %1899 }
 0x4fb   :  { %v4404_v0 = vcvt.s32.f32 %v2256_v20  ;;  %v2270_v16 = vshra.s32 %v4401_v12, 16  ;;  %vm1937_vm8 = vcmp.eq.f32.partialorder %v4154_v2, %v1900_v45  ;;  %2301 = vmin.xlane.f32.xlu1 %v4398_v49 }
 0x4fc   :  { %v1902_v8 = vpop.xlane.xlu1 %1901  ;;  %v4412_v27 = vsel %vm1937_vm8, %v4218_v18, 128 }
 0x4fd   :  { %4783 = vst [vmem:[#allocation2_spill] sm:$0xff] %v4404_v0  ;;  %v4409_v42 = vcvt.s32.f32 %v2270_v16  ;;  %4785 = vst [vmem:[#allocation4_spill] sm:$0xff] %v4412_v27  ;;  %vm1938_vm9 = vcmp.eq.f32.partialorder %v4165_v19, %v1902_v8  ;;  %v2340_v48 = vshra.s32 %v4412_v27, 16  ;;  %2259 = vmin.xlane.f32.xlu0 %v4404_v0 }
 0x4fe   :  { %v4417_v29 = vsel %vm1938_vm9, %v4218_v18, 128  ;;  %v1896_v20 = vpop.xlane.xlu0 %1895 }
 0x4ff   :  { %4784 = vst [vmem:[#allocation3_spill] sm:$0xff] %v4409_v42  ;;  %v2354_v2 = vshra.s32 %v4417_v29, 16  ;;  %vm1935_vm10 = vcmp.eq.f32.partialorder %v4158_v55, %v1896_v20  ;;  %v4422_v45 = vcvt.s32.f32 %v2340_v48  ;;  %2273 = vmin.xlane.f32.xlu1 %v4409_v42 }
 0x500   :  { %v4425_v16 = vsel %vm1935_vm10, %v4218_v18, 128  ;;  %v1898_v19 = vpop.xlane.xlu1 %1897 }
 0x501   :  { %4786 = vst [vmem:[#allocation5_spill] sm:$0xff] %v4425_v16  ;;  %v4428_v8 = vcvt.s32.f32 %v2354_v2  ;;  %v2312_v27 = vshra.s32 %v4425_v16, 16  ;;  %vm1936_vm11 = vcmp.eq.f32.partialorder %v4173_v25, %v1898_v19  ;;  %2343 = vmin.xlane.f32.xlu0 %v4422_v45 }
 0x502   :  { %v4436_v55 = vsel %vm1936_vm11, %v4218_v18, 128 }
 0x503   :  { %v4433_v0 = vcvt.s32.f32 %v2312_v27  ;;  %4788 = vst [vmem:[#allocation7_spill] sm:$0xff] %v4436_v55  ;;  %v1904_v48 = vpop.xlane.xlu0 %1903  ;;  %v2326_v20 = vshra.s32 %v4436_v55, 16  ;;  %2357 = vmin.xlane.f32.xlu1 %v4428_v8 }
 0x504   :  { %vm1939_vm12 = vcmp.eq.f32.partialorder %v4190_v44, %v1904_v48 }
 0x505   :  { %4787 = vst [vmem:[#allocation6_spill] sm:$0xff] %v4433_v0  ;;  %v4442_v2 = vsel %vm1939_vm12, %v4218_v18, 128  ;;  %v1906_v16 = vpop.xlane.xlu1 %1905  ;;  %v4444_v42 = vcvt.s32.f32 %v2326_v20  ;;  %2315 = vmin.xlane.f32.xlu0 %v4433_v0 }
 0x506   :  { %v2368_v25 = vshra.s32 %v4442_v2, 16  ;;  %vm1940_vm13 = vcmp.eq.f32.partialorder %v4204_v63, %v1906_v16 }
 0x507   :  { %v1908_v27 = vpop.xlane.xlu0 %1907  ;;  %v4452_v55 = vsel %vm1940_vm13, %v4218_v18, 128  ;;  %2329 = vmin.xlane.f32.xlu1 %v4444_v42 }
 0x508   :  { %v4449_v19 = vcvt.s32.f32 %v2368_v25  ;;  %vm1941_vm14 = vcmp.eq.f32.partialorder %v4186_v39, %v1908_v27  ;;  %v2382_v44 = vshra.s32 %v4452_v55, 16 }
 0x509   :  { %v4458_v48 = vsel %vm1941_vm14, %v4218_v18, 128  ;;  %v1910_v20 = vpop.xlane.xlu1 %1909 }
 0x50a   :  { %4789 = vst [vmem:[#allocation8_spill] sm:$0xff] %v4449_v19  ;;  %v2396_v0 = vshra.s32 %v4458_v48, 16  ;;  %vm1942_vm15 = vcmp.eq.f32.partialorder %v4197_v59, %v1910_v20  ;;  %2371 = vmin.xlane.f32.xlu0 %v4449_v19  ;;  %v4463_v63 = vcvt.s32.f32 %v2382_v44  ;;  %v2003_v59 = vand.u32 65535, %v4222_v13 }
 0x50b   :  { %v4466_v16 = vsel %vm1942_vm15, %v4218_v18, 128  ;;  %v2017_v44 = vand.u32 65535, %v4227_v38  ;;  %v1975_v18 = vand.u32 65535, %v4233_v51 }
 0x50c   :  { %4790 = vst [vmem:[#allocation9_spill] sm:$0xff] %v4463_v63  ;;  %4791 = vst [vmem:[#allocation10_spill] sm:$0xff] %v4466_v16  ;;  %v4468_v25 = vcvt.s32.f32 %v2396_v0  ;;  %v2410_v39 = vshra.s32 %v4466_v16, 16  ;;  %2385 = vmin.xlane.f32.xlu1 %v4463_v63  ;;  %v2005_v20 = vcvt.s32.f32 %v2003_v59 }
 0x50d   :  { %v2019_v63 = vcvt.s32.f32 %v2017_v44  ;;  %v2059_v44 = vand.u32 65535, %v4254_v43 }
 0x50e   :  { %v4472_v27 = vcvt.s32.f32 %v2410_v39  ;;  %2399 = vmin.xlane.f32.xlu0 %v4468_v25  ;;  %v1989_v39 = vand.u32 65535, %v4240_v4 }
 0x510   :  { %4792 = vst [vmem:[#allocation11_spill] sm:$0xff] %v4472_v27  ;;  %2413 = vmin.xlane.f32.xlu1 %v4472_v27  ;;  %v1977_v27 = vcvt.s32.f32 %v1975_v18 }
 0x540   :  { %v4479_v19 = vpop.xlane.xlu0 %2007 }
 0x541   :  { %vm2009_vm0 = vcmp.eq.f32.partialorder %v4230_v9, %v4479_v19  ;;  %v1991_v9 = vcvt.s32.f32 %v1989_v39 }
 0x542   :  { %v2010_v0 = vsel %vm2009_vm0, %v2005_v20, inf  ;;  %v4484_v16 = vpop.xlane.xlu1 %2021  ;;  %v2061_v20 = vcvt.s32.f32 %v2059_v44  ;;  %v2087_v44 = vand.u32 65535, %v4300_v61  ;;  %v2171_v61 = vand.u32 65535, %v4317_v31 }
 0x543   :  { %2011 = vmin.xlane.f32.xlu0 %v2010_v0  ;;  %vm2023_vm1 = vcmp.eq.f32.partialorder %v4242_v60, %v4484_v16  ;;  %v2073_v60 = vand.u32 65535, %v4259_v11  ;;  %v2157_v31 = vand.u32 65535, %v4338_v17  ;;  %v2241_v17 = vand.u32 65535, %v4354_v3 }
 0x544   :  { %v4488_v13 = vpop.xlane.xlu0 %1979  ;;  %v2024_v38 = vsel %vm2023_vm1, %v2019_v63, inf }
 0x545   :  { %vm1981_vm2 = vcmp.eq.f32.partialorder %v4244_v22, %v4488_v13  ;;  %2025 = vmin.xlane.f32.xlu1 %v2024_v38  ;;  %v2031_v22 = vand.u32 65535, %v4268_v30  ;;  %v2075_v63 = vcvt.s32.f32 %v2073_v60  ;;  %v2101_v60 = vand.u32 65535, %v4306_v62 }
 0x546   :  { %v1982_v51 = vsel %vm1981_vm2, %v1977_v27, inf  ;;  %v4492_v59 = vpop.xlane.xlu1 %1993  ;;  %v2045_v27 = vand.u32 65535, %v4274_v34 }
 0x547   :  { %1983 = vmin.xlane.f32.xlu0 %v1982_v51  ;;  %vm1995_vm3 = vcmp.eq.f32.partialorder %v4248_v24, %v4492_v59  ;;  %v2033_v11 = vcvt.s32.f32 %v2031_v22  ;;  %v2129_v51 = vand.u32 65535, %v4291_v7  ;;  %v2089_v7 = vcvt.s32.f32 %v2087_v44 }
 0x548   :  { %v1996_v4 = vsel %vm1995_vm3, %v1991_v9, inf  ;;  %v2047_v38 = vcvt.s32.f32 %v2045_v27  ;;  %v2185_v27 = vand.u32 65535, %v4323_v33 }
 0x549   :  { %1997 = vmin.xlane.f32.xlu1 %v1996_v4 }
 0x559   :  { %v4498_v18 = vpop.xlane.xlu0 %2063 }
 0x55a   :  { %vm2065_vm4 = vcmp.eq.f32.partialorder %v4261_v21, %v4498_v18 }
 0x55b   :  { %v4504_v0 = vpop.xlane.xlu1 %2077  ;;  %v2066_v24 = vsel %vm2065_vm4, %v2061_v20, inf }
 0x55c   :  { %vm2079_vm5 = vcmp.eq.f32.partialorder %v4265_v26, %v4504_v0  ;;  %2067 = vmin.xlane.f32.xlu0 %v2066_v24  ;;  %v2115_v26 = vand.u32 65535, %v4286_v37  ;;  %v2173_v24 = vcvt.s32.f32 %v2171_v61 }
 0x55d   :  { %v2080_v43 = vsel %vm2079_vm5, %v2075_v63, inf  ;;  %v4508_v39 = vpop.xlane.xlu0 %2035  ;;  %v2103_v63 = vcvt.s32.f32 %v2101_v60 }
 0x55e   :  { %2081 = vmin.xlane.f32.xlu1 %v2080_v43  ;;  %vm2037_vm6 = vcmp.eq.f32.partialorder %v4278_v23, %v4508_v39  ;;  %v2117_v9 = vcvt.s32.f32 %v2115_v26  ;;  %v2131_v23 = vcvt.s32.f32 %v2129_v51 }
 0x55f   :  { %v4512_v21 = vpop.xlane.xlu1 %2049  ;;  %v2038_v30 = vsel %vm2037_vm6, %v2033_v11, inf  ;;  %v2143_v11 = vand.u32 65535, %v4332_v41  ;;  %v2159_v41 = vcvt.s32.f32 %v2157_v31  ;;  %v4794_v31 = vld [vmem:[#allocation2_spill] sm:$0xff] }
 0x560   :  { %vm2051_vm7 = vcmp.eq.f32.partialorder %v4280_v14, %v4512_v21  ;;  %2039 = vmin.xlane.f32.xlu0 %v2038_v30 }
 0x561   :  { %v2052_v34 = vsel %vm2051_vm7, %v2047_v38, inf  ;;  %v2145_v30 = vcvt.s32.f32 %v2143_v11 }
 0x562   :  { %2053 = vmin.xlane.f32.xlu1 %v2052_v34  ;;  %v2227_v34 = vand.u32 65535, %v4348_v56  ;;  %v2199_v56 = vand.u32 65535, %v4364_v35 }
 0x56a   :  { %v4518_v4 = vpop.xlane.xlu0 %2119 }
 0x56b   :  { %vm2121_vm8 = vcmp.eq.f32.partialorder %v4293_v5, %v4518_v4 }
 0x56c   :  { %v4524_v14 = vpop.xlane.xlu1 %2133  ;;  %v2122_v20 = vsel %vm2121_vm8, %v2117_v9, inf  ;;  %v2229_v9 = vcvt.s32.f32 %v2227_v34  ;;  %v4796_v34 = vld [vmem:[#allocation5_spill] sm:$0xff] }
 0x56d   :  { %vm2135_vm9 = vcmp.eq.f32.partialorder %v4297_v54, %v4524_v14  ;;  %2123 = vmin.xlane.f32.xlu0 %v2122_v20  ;;  %v2201_v20 = vcvt.s32.f32 %v2199_v56 }
 0x56e   :  { %v2136_v37 = vsel %vm2135_vm9, %v2131_v23, inf  ;;  %v4528_v22 = vpop.xlane.xlu0 %2091  ;;  %v2213_v23 = vand.u32 65535, %v4370_v57  ;;  %v2297_v57 = vand.u32 65535, %v4388_v32 }
 0x56f   :  { %2137 = vmin.xlane.f32.xlu1 %v2136_v37  ;;  %vm2093_vm10 = vcmp.eq.f32.partialorder %v4310_v1, %v4528_v22  ;;  %v2187_v1 = vcvt.s32.f32 %v2185_v27  ;;  %v2283_v37 = vand.u32 65535, %v4378_v28  ;;  %v2255_v28 = vand.u32 65535, %v4394_v10 }
 0x570   :  { %v4532_v5 = vpop.xlane.xlu1 %2105  ;;  %v2094_v62 = vsel %vm2093_vm10, %v2089_v7, inf  ;;  %v2215_v35 = vcvt.s32.f32 %v2213_v23 }
 0x571   :  { %vm2107_vm11 = vcmp.eq.f32.partialorder %v4312_v58, %v4532_v5  ;;  %2095 = vmin.xlane.f32.xlu0 %v2094_v62  ;;  %v2285_v61 = vcvt.s32.f32 %v2283_v37  ;;  %v4798_v37 = vld [vmem:[#allocation6_spill] sm:$0xff] }
 0x572   :  { %v2108_v54 = vsel %vm2107_vm11, %v2103_v63, inf }
 0x573   :  { %2109 = vmin.xlane.f32.xlu1 %v2108_v54  ;;  %v2269_v54 = vand.u32 65535, %v4401_v12  ;;  %v2353_v12 = vand.u32 65535, %v4417_v29 }
 0x575   :  { %v4538_v43 = vpop.xlane.xlu0 %2175 }
 0x576   :  { %vm2177_vm12 = vcmp.eq.f32.partialorder %v4325_v50, %v4538_v43 }
 0x577   :  { %v4544_v38 = vpop.xlane.xlu1 %2189  ;;  %v2178_v58 = vsel %vm2177_vm12, %v2173_v24, inf  ;;  %v4793_v24 = vld [vmem:[#allocation4_spill] sm:$0xff] }
 0x578   :  { %vm2191_vm13 = vcmp.eq.f32.partialorder %v4329_v6, %v4544_v38  ;;  %2179 = vmin.xlane.f32.xlu0 %v2178_v58  ;;  %v2339_v11 = vand.u32 65535, %v4793_v24 }
 0x579   :  { %v2192_v33 = vsel %vm2191_vm13, %v2187_v1, inf  ;;  %v4549_v26 = vpop.xlane.xlu0 %2147 }
 0x57a   :  { %2193 = vmin.xlane.f32.xlu1 %v2192_v33  ;;  %vm2149_vm14 = vcmp.eq.f32.partialorder %v4342_v15, %v4549_v26  ;;  %v2243_v15 = vcvt.s32.f32 %v2241_v17 }
 0x57b   :  { %v4553_v50 = vpop.xlane.xlu1 %2161  ;;  %v2150_v6 = vsel %vm2149_vm14, %v2145_v30, inf  ;;  %v4795_v30 = vld [vmem:[#allocation3_spill] sm:$0xff] }
 0x57c   :  { %vm2163_vm15 = vcmp.eq.f32.partialorder %v4345_v40, %v4553_v50  ;;  %2151 = vmin.xlane.f32.xlu0 %v2150_v6 }
 0x57d   :  { %v2164_v51 = vsel %vm2163_vm15, %v2159_v41, inf  ;;  %v2311_v41 = vand.u32 65535, %v4796_v34 }
 0x57e   :  { %v4558_v44 = vpop.xlane.xlu0 %2231  ;;  %2165 = vmin.xlane.f32.xlu1 %v2164_v51  ;;  %v2355_v51 = vcvt.s32.f32 %v2353_v12  ;;  %v4802_v12 = vld [vmem:[#allocation11_spill] sm:$0xff] }
 0x57f   :  { %vm2233_vm0 = vcmp.eq.f32.partialorder %v4357_v47, %v4558_v44  ;;  %v2313_v23 = vcvt.s32.f32 %v2311_v41 }
 0x580   :  { %v4564_v60 = vpop.xlane.xlu1 %2245  ;;  %v2234_v3 = vsel %vm2233_vm0, %v2229_v9, inf  ;;  %v4797_v9 = vld [vmem:[#allocation7_spill] sm:$0xff] }
 0x581   :  { %vm2247_vm1 = vcmp.eq.f32.partialorder %v4361_v52, %v4564_v60  ;;  %2235 = vmin.xlane.f32.xlu0 %v2234_v3  ;;  %v2325_v29 = vand.u32 65535, %v4797_v9  ;;  %v2367_v3 = vand.u32 65535, %v4442_v2  ;;  %v2395_v2 = vand.u32 65535, %v4458_v48 }
 0x582   :  { %v2248_v40 = vsel %vm2247_vm1, %v2243_v15, inf  ;;  %v4569_v7 = vpop.xlane.xlu0 %2203 }
 0x583   :  { %2249 = vmin.xlane.f32.xlu1 %v2248_v40  ;;  %vm2205_vm2 = vcmp.eq.f32.partialorder %v4375_v36, %v4569_v7  ;;  %v2299_v36 = vcvt.s32.f32 %v2297_v57 }
 0x584   :  { %v4573_v47 = vpop.xlane.xlu1 %2217  ;;  %v2206_v52 = vsel %vm2205_vm2, %v2201_v20, inf }
 0x585   :  { %vm2219_vm3 = vcmp.eq.f32.partialorder %v4380_v53, %v4573_v47  ;;  %2207 = vmin.xlane.f32.xlu0 %v2206_v52  ;;  %v2257_v53 = vcvt.s32.f32 %v2255_v28  ;;  %v2381_v52 = vand.u32 65535, %v4452_v55  ;;  %v4799_v28 = vld [vmem:[#allocation8_spill] sm:$0xff]  ;;  %v2397_v55 = vcvt.s32.f32 %v2395_v2 }
 0x586   :  { %v2220_v63 = vsel %vm2219_vm3, %v2215_v35, inf  ;;  %v4579_v62 = vpop.xlane.xlu0 %2287 }
 0x587   :  { %2221 = vmin.xlane.f32.xlu1 %v2220_v63  ;;  %vm2289_vm4 = vcmp.eq.f32.partialorder %v4385_v46, %v4579_v62  ;;  %v2271_v46 = vcvt.s32.f32 %v2269_v54  ;;  %v2383_v54 = vcvt.s32.f32 %v2381_v52  ;;  %v2070_v52 = vcvt.f32.s32 %v4498_v18 }
 0x588   :  { %v4584_v27 = vpop.xlane.xlu1 %2301  ;;  %v2290_v32 = vsel %vm2289_vm4, %v2285_v61, inf }
 0x589   :  { %vm2303_vm5 = vcmp.eq.f32.partialorder %v4398_v49, %v4584_v27  ;;  %2291 = vmin.xlane.f32.xlu0 %v2290_v32  ;;  %v2341_v49 = vcvt.s32.f32 %v2339_v11  ;;  %v4800_v32 = vld [vmem:[#allocation10_spill] sm:$0xff] }
 0x58a   :  { %v4589_v10 = vpop.xlane.xlu0 %2259  ;;  %v2304_v1 = vsel %vm2303_vm5, %v2299_v36, inf }
 0x58b   :  { %vm2261_vm6 = vcmp.eq.f32.partialorder %v4794_v31, %v4589_v10  ;;  %2305 = vmin.xlane.f32.xlu1 %v2304_v1 }
 0x58c   :  { %v4594_v58 = vpop.xlane.xlu1 %2273  ;;  %v2262_v33 = vsel %vm2261_vm6, %v2257_v53, inf  ;;  %v2409_v53 = vand.u32 65535, %v4800_v32 }
 0x58d   :  { %vm2275_vm7 = vcmp.eq.f32.partialorder %v4795_v30, %v4594_v58  ;;  %2263 = vmin.xlane.f32.xlu0 %v2262_v33  ;;  %v2014_v30 = vcvt.f32.s32 %v4479_v19 }
 0x58e   :  { %v4599_v17 = vpop.xlane.xlu0 %2343  ;;  %v2276_v6 = vsel %vm2275_vm7, %v2271_v46, inf  ;;  %v2411_v31 = vcvt.s32.f32 %v2409_v53  ;;  %v2056_v53 = vcvt.f32.s32 %v4512_v21  ;;  %v2126_v21 = vcvt.f32.s32 %v4518_v4 }
 0x58f   :  { %vm2345_vm8 = vcmp.eq.f32.partialorder %v4422_v45, %v4599_v17  ;;  %2277 = vmin.xlane.f32.xlu1 %v2276_v6  ;;  %v2327_v45 = vcvt.s32.f32 %v2325_v29  ;;  %v2015_v41 = vshll.u32 %v2014_v30, 16 }
 0x590   :  { %v4604_v56 = vpop.xlane.xlu1 %2357  ;;  %v2346_v15 = vsel %vm2345_vm8, %v2341_v49, inf  ;;  %v2028_v49 = vcvt.f32.s32 %v4484_v16 }
 0x591   :  { %vm2359_vm9 = vcmp.eq.f32.partialorder %v4428_v8, %v4604_v56  ;;  %2347 = vmin.xlane.f32.xlu0 %v2346_v15  ;;  %v2369_v8 = vcvt.s32.f32 %v2367_v3  ;;  %v2000_v15 = vcvt.f32.s32 %v4492_v59 }
 0x592   :  { %v4609_v40 = vpop.xlane.xlu0 %2315  ;;  %v2360_v20 = vsel %vm2359_vm9, %v2355_v51, inf  ;;  %v2029_v29 = vshll.u32 %v2028_v49, 16  ;;  %v2140_v49 = vcvt.f32.s32 %v4524_v14 }
 0x593   :  { %vm2317_vm10 = vcmp.eq.f32.partialorder %v4798_v37, %v4609_v40  ;;  %2361 = vmin.xlane.f32.xlu1 %v2360_v20 }
 0x594   :  { %v4613_v35 = vpop.xlane.xlu1 %2329  ;;  %v2318_v57 = vsel %vm2317_vm10, %v2313_v23, inf }
 0x595   :  { %vm2331_vm11 = vcmp.eq.f32.partialorder %v4444_v42, %v4613_v35  ;;  %2319 = vmin.xlane.f32.xlu0 %v2318_v57  ;;  %v4801_v42 = vld [vmem:[#allocation9_spill] sm:$0xff]  ;;  %v2001_v57 = vshll.u32 %v2000_v15, 16 }
 0x596   :  { %v2332_v63 = vsel %vm2331_vm11, %v2327_v45, inf }
 0x597   :  { %v4619_v61 = vpop.xlane.xlu0 %2371  ;;  %2333 = vmin.xlane.f32.xlu1 %v2332_v63  ;;  %v2071_v63 = vshll.u32 %v2070_v52, 16 }
 0x598   :  { %vm2373_vm12 = vcmp.eq.f32.partialorder %v4799_v28, %v4619_v61 }
 0x599   :  { %v2374_v36 = vsel %vm2373_vm12, %v2369_v8, inf  ;;  %v4624_v24 = vpop.xlane.xlu1 %2385  ;;  %v2084_v8 = vcvt.f32.s32 %v4504_v0 }
 0x59a   :  { %2375 = vmin.xlane.f32.xlu0 %v2374_v36  ;;  %vm2387_vm13 = vcmp.eq.f32.partialorder %v4801_v42, %v4624_v24  ;;  %v2042_v36 = vcvt.f32.s32 %v4508_v39 }
 0x59b   :  { %v4628_v11 = vpop.xlane.xlu0 %2399  ;;  %v2388_v48 = vsel %vm2387_vm13, %v2383_v54, inf  ;;  %v2085_v32 = vshll.u32 %v2084_v8, 16  ;;  %v2154_v8 = vcvt.f32.s32 %v4549_v26 }
 0x59c   :  { %vm2401_vm14 = vcmp.eq.f32.partialorder %v4468_v25, %v4628_v11  ;;  %2389 = vmin.xlane.f32.xlu1 %v2388_v48  ;;  %v1986_v25 = vcvt.f32.s32 %v4488_v13  ;;  %v2043_v18 = vshll.u32 %v2042_v36, 16 }
 0x59d   :  { %v2402_v1 = vsel %vm2401_vm14, %v2397_v55, inf  ;;  %v4632_v46 = vpop.xlane.xlu1 %2413 }
 0x59e   :  { %2403 = vmin.xlane.f32.xlu0 %v2402_v1  ;;  %vm2415_vm15 = vcmp.eq.f32.partialorder %v4802_v12, %v4632_v46  ;;  %v1987_v20 = vshll.u32 %v1986_v25, 16  ;;  %v2057_v12 = vshll.u32 %v2056_v53, 16  ;;  %v2238_v53 = vcvt.f32.s32 %v4558_v44 }
 0x59f   :  { %v2416_v33 = vsel %vm2415_vm15, %v2411_v31, inf  ;;  %v2210_v44 = vcvt.f32.s32 %v4569_v7 }
 0x5a0   :  { %2417 = vmin.xlane.f32.xlu1 %v2416_v33 }
 0x5d0   :  { %v2012_v34 = vpop.xlane.xlu0 %2011 }
 0x5d1   :  { %v2013_v6 = vcvt.f32.s32 %v2012_v34 }
 0x5d2   :  { %v2026_v9 = vpop.xlane.xlu1 %2025 }
 0x5d3   :  { %v2016_v51 = vadd.s32 %v2015_v41, %v2013_v6  ;;  %v2027_v23 = vcvt.f32.s32 %v2026_v9  ;;  %v2127_v41 = vshll.u32 %v2126_v21, 16  ;;  %v2098_v6 = vcvt.f32.s32 %v4528_v22 }
 0x5d4   :  { %v1984_v3 = vpop.xlane.xlu0 %1983  ;;  %v2141_v9 = vshll.u32 %v2140_v49, 16 }
 0x5d5   :  { %2425 = vst [vmem:[%s4772_s8 + $0x10] sm:$0xff] %v2016_v51  ;;  %v1985_v19 = vcvt.f32.s32 %v1984_v3  ;;  %v2030_v37 = vadd.s32 %v2029_v29, %v2027_v23  ;;  %v2112_v29 = vcvt.f32.s32 %v4532_v5  ;;  %v2099_v4 = vshll.u32 %v2098_v6, 16 }
 0x5d6   :  { %v1998_v45 = vpop.xlane.xlu1 %1997 }
 0x5d7   :  { %v1988_v16 = vadd.s32 %v1987_v20, %v1985_v19  ;;  %2426 = vst [vmem:[%s4772_s8 + $0x18] sm:$0xff] %v2030_v37  ;;  %v1999_v13 = vcvt.f32.s32 %v1998_v45  ;;  %v2113_v37 = vshll.u32 %v2112_v29, 16 }
 0x5d9   :  { %2423 = vst [vmem:[%s4772_s8] sm:$0xff] %v1988_v16  ;;  %v2002_v59 = vadd.s32 %v2001_v57, %v1999_v13  ;;  %v2182_v16 = vcvt.f32.s32 %v4538_v43  ;;  %v2196_v57 = vcvt.f32.s32 %v4544_v38  ;;  %v2168_v43 = vcvt.f32.s32 %v4553_v50 }
 0x5da   :  { %v2252_v50 = vcvt.f32.s32 %v4564_v60 }
 0x5db   :  { %2424 = vst [vmem:[%s4772_s8 + $0x8] sm:$0xff] %v2002_v59  ;;  %v2183_v59 = vshll.u32 %v2182_v16, 16 }
 0x5e9   :  { %v2068_v2 = vpop.xlane.xlu0 %2067 }
 0x5ea   :  { %v2069_v28 = vcvt.f32.s32 %v2068_v2 }
 0x5eb   :  { %v2082_v54 = vpop.xlane.xlu1 %2081 }
 0x5ec   :  { %v2072_v55 = vadd.s32 %v2071_v63, %v2069_v28  ;;  %v2083_v42 = vcvt.f32.s32 %v2082_v54  ;;  %v2197_v63 = vshll.u32 %v2196_v57, 16 }
 0x5ed   :  { %v2040_v1 = vpop.xlane.xlu0 %2039 }
 0x5ee   :  { %2429 = vst [vmem:[%s4772_s8 + $0x30] sm:$0xff] %v2072_v55  ;;  %v2086_v48 = vadd.s32 %v2085_v32, %v2083_v42  ;;  %v2041_v31 = vcvt.f32.s32 %v2040_v1  ;;  %v2155_v32 = vshll.u32 %v2154_v8, 16 }
 0x5ef   :  { %v2054_v0 = vpop.xlane.xlu1 %2053 }
 0x5f0   :  { %2430 = vst [vmem:[%s4772_s8 + $0x38] sm:$0xff] %v2086_v48  ;;  %v2055_v39 = vcvt.f32.s32 %v2054_v0  ;;  %v2044_v33 = vadd.s32 %v2043_v18, %v2041_v31  ;;  %v2169_v48 = vshll.u32 %v2168_v43, 16  ;;  %v2239_v0 = vshll.u32 %v2238_v53, 16 }
 0x5f2   :  { %v2058_v30 = vadd.s32 %v2057_v12, %v2055_v39  ;;  %2427 = vst [vmem:[%s4772_s8 + $0x20] sm:$0xff] %v2044_v33  ;;  %v2253_v33 = vshll.u32 %v2252_v50, 16 }
 0x5f4   :  { %2428 = vst [vmem:[%s4772_s8 + $0x28] sm:$0xff] %v2058_v30  ;;  %v2224_v30 = vcvt.f32.s32 %v4573_v47  ;;  %v2308_v47 = vcvt.f32.s32 %v4584_v27 }
 0x5fa   :  { %v2124_v34 = vpop.xlane.xlu0 %2123 }
 0x5fb   :  { %v2125_v25 = vcvt.f32.s32 %v2124_v34 }
 0x5fc   :  { %v2138_v51 = vpop.xlane.xlu1 %2137 }
 0x5fd   :  { %v2128_v15 = vadd.s32 %v2127_v41, %v2125_v25  ;;  %v2139_v23 = vcvt.f32.s32 %v2138_v51  ;;  %v2211_v41 = vshll.u32 %v2210_v44, 16  ;;  %v2294_v25 = vcvt.f32.s32 %v4579_v62 }
 0x5fe   :  { %v2096_v20 = vpop.xlane.xlu0 %2095  ;;  %v2225_v51 = vshll.u32 %v2224_v30, 16  ;;  %v2420_v30 = vcvt.f32.s32 %v4632_v46 }
 0x5ff   :  { %2433 = vst [vmem:[%s4772_s8 + $0x50] sm:$0xff] %v2128_v15  ;;  %v2142_v3 = vadd.s32 %v2141_v9, %v2139_v23  ;;  %v2097_v19 = vcvt.f32.s32 %v2096_v20  ;;  %v2266_v20 = vcvt.f32.s32 %v4589_v10 }
 0x600   :  { %v2110_v14 = vpop.xlane.xlu1 %2109 }
 0x601   :  { %2434 = vst [vmem:[%s4772_s8 + $0x58] sm:$0xff] %v2142_v3  ;;  %v2111_v22 = vcvt.f32.s32 %v2110_v14  ;;  %v2100_v5 = vadd.s32 %v2099_v4, %v2097_v19  ;;  %v2295_v3 = vshll.u32 %v2294_v25, 16  ;;  %v2309_v19 = vshll.u32 %v2308_v47, 16 }
 0x602   :  { %v2280_v14 = vcvt.f32.s32 %v4594_v58  ;;  %v2267_v16 = vshll.u32 %v2266_v20, 16  ;;  %v2421_v25 = vshll.u32 %v2420_v30, 16 }
 0x603   :  { %v2114_v45 = vadd.s32 %v2113_v37, %v2111_v22  ;;  %2431 = vst [vmem:[%s4772_s8 + $0x40] sm:$0xff] %v2100_v5  ;;  %v2350_v5 = vcvt.f32.s32 %v4599_v17  ;;  %v2322_v17 = vcvt.f32.s32 %v4609_v40  ;;  %v2378_v40 = vcvt.f32.s32 %v4619_v61 }
 0x604   :  { %v2406_v61 = vcvt.f32.s32 %v4628_v11 }
 0x605   :  { %2432 = vst [vmem:[%s4772_s8 + $0x48] sm:$0xff] %v2114_v45  ;;  %v2180_v13 = vpop.xlane.xlu0 %2179  ;;  %v2323_v53 = vshll.u32 %v2322_v17, 16 }
 0x606   :  { %v2181_v52 = vcvt.f32.s32 %v2180_v13  ;;  %v2281_v13 = vshll.u32 %v2280_v14, 16 }
 0x607   :  { %v2194_v2 = vpop.xlane.xlu1 %2193 }
 0x608   :  { %v2184_v28 = vadd.s32 %v2183_v59, %v2181_v52  ;;  %v2195_v36 = vcvt.f32.s32 %v2194_v2  ;;  %v2364_v59 = vcvt.f32.s32 %v4604_v56  ;;  %v2351_v2 = vshll.u32 %v2350_v5, 16 }
 0x609   :  { %v2152_v54 = vpop.xlane.xlu0 %2151  ;;  %v2336_v56 = vcvt.f32.s32 %v4613_v35 }
 0x60a   :  { %2437 = vst [vmem:[%s4772_s8 + $0x70] sm:$0xff] %v2184_v28  ;;  %v2198_v38 = vadd.s32 %v2197_v63, %v2195_v36  ;;  %v2153_v55 = vcvt.f32.s32 %v2152_v54  ;;  %v2365_v36 = vshll.u32 %v2364_v59, 16 }
 0x60b   :  { %v2166_v42 = vpop.xlane.xlu1 %2165 }
 0x60c   :  { %2438 = vst [vmem:[%s4772_s8 + $0x78] sm:$0xff] %v2198_v38  ;;  %v2167_v26 = vcvt.f32.s32 %v2166_v42  ;;  %v2156_v1 = vadd.s32 %v2155_v32, %v2153_v55 }
 0x60e   :  { %v2170_v18 = vadd.s32 %v2169_v48, %v2167_v26  ;;  %v2236_v31 = vpop.xlane.xlu0 %2235  ;;  %2435 = vst [vmem:[%s4772_s8 + $0x60] sm:$0xff] %v2156_v1  ;;  %v2337_v26 = vshll.u32 %v2336_v56, 16  ;;  %v2392_v1 = vcvt.f32.s32 %v4624_v24 }
 0x60f   :  { %v2237_v12 = vcvt.f32.s32 %v2236_v31  ;;  %v2379_v31 = vshll.u32 %v2378_v40, 16 }
 0x610   :  { %2436 = vst [vmem:[%s4772_s8 + $0x68] sm:$0xff] %v2170_v18  ;;  %v2250_v39 = vpop.xlane.xlu1 %2249 }
 0x611   :  { %v2240_v60 = vadd.s32 %v2239_v0, %v2237_v12  ;;  %v2251_v21 = vcvt.f32.s32 %v2250_v39 }
 0x612   :  { %v2208_v34 = vpop.xlane.xlu0 %2207 }
 0x613   :  { %2441 = vst [vmem:[%s4772_s8 + $0x90] sm:$0xff] %v2240_v60  ;;  %v2254_v49 = vadd.s32 %v2253_v33, %v2251_v21  ;;  %v2209_v7 = vcvt.f32.s32 %v2208_v34  ;;  %v2393_v33 = vshll.u32 %v2392_v1, 16  ;;  %v2407_v21 = vshll.u32 %v2406_v61, 16 }
 0x614   :  { %v2222_v6 = vpop.xlane.xlu1 %2221 }
 0x615   :  { %2442 = vst [vmem:[%s4772_s8 + $0x98] sm:$0xff] %v2254_v49  ;;  %v2223_v9 = vcvt.f32.s32 %v2222_v6  ;;  %v2212_v29 = vadd.s32 %v2211_v41, %v2209_v7 }
 0x616   :  { %v2292_v23 = vpop.xlane.xlu0 %2291 }
 0x617   :  { %v2226_v15 = vadd.s32 %v2225_v51, %v2223_v9  ;;  %2439 = vst [vmem:[%s4772_s8 + $0x80] sm:$0xff] %v2212_v29  ;;  %v2293_v62 = vcvt.f32.s32 %v2292_v23 }
 0x618   :  { %v2306_v4 = vpop.xlane.xlu1 %2305 }
 0x619   :  { %2440 = vst [vmem:[%s4772_s8 + $0x88] sm:$0xff] %v2226_v15  ;;  %v2296_v27 = vadd.s32 %v2295_v3, %v2293_v62  ;;  %v2307_v37 = vcvt.f32.s32 %v2306_v4 }
 0x61a   :  { %v2264_v22 = vpop.xlane.xlu0 %2263 }
 0x61b   :  { %2445 = vst [vmem:[%s4772_s8 + $0xb0] sm:$0xff] %v2296_v27  ;;  %v2310_v10 = vadd.s32 %v2309_v19, %v2307_v37  ;;  %v2265_v45 = vcvt.f32.s32 %v2264_v22 }
 0x61c   :  { %v2278_v57 = vpop.xlane.xlu1 %2277 }
 0x61d   :  { %2446 = vst [vmem:[%s4772_s8 + $0xb8] sm:$0xff] %v2310_v10  ;;  %v2268_v58 = vadd.s32 %v2267_v16, %v2265_v45  ;;  %v2279_v52 = vcvt.f32.s32 %v2278_v57 }
 0x61e   :  { %v2348_v8 = vpop.xlane.xlu0 %2347 }
 0x61f   :  { %2443 = vst [vmem:[%s4772_s8 + $0xa0] sm:$0xff] %v2268_v58  ;;  %v2282_v63 = vadd.s32 %v2281_v13, %v2279_v52  ;;  %v2349_v43 = vcvt.f32.s32 %v2348_v8 }
 0x620   :  { %v2362_v28 = vpop.xlane.xlu1 %2361 }
 0x621   :  { %2444 = vst [vmem:[%s4772_s8 + $0xa8] sm:$0xff] %v2282_v63  ;;  %v2352_v38 = vadd.s32 %v2351_v2, %v2349_v43  ;;  %v2363_v54 = vcvt.f32.s32 %v2362_v28 }
 0x622   :  { %v2320_v32 = vpop.xlane.xlu0 %2319 }
 0x623   :  { %2449 = vst [vmem:[%s4772_s8 + $0xd0] sm:$0xff] %v2352_v38  ;;  %v2366_v55 = vadd.s32 %v2365_v36, %v2363_v54  ;;  %v2321_v42 = vcvt.f32.s32 %v2320_v32 }
 0x624   :  { %v2334_v48 = vpop.xlane.xlu1 %2333 }
 0x625   :  { %2450 = vst [vmem:[%s4772_s8 + $0xd8] sm:$0xff] %v2366_v55  ;;  %v2324_v35 = vadd.s32 %v2323_v53, %v2321_v42  ;;  %v2335_v50 = vcvt.f32.s32 %v2334_v48 }
 0x627   :  { %v2376_v18 = vpop.xlane.xlu0 %2375  ;;  %2447 = vst [vmem:[%s4772_s8 + $0xc0] sm:$0xff] %v2324_v35  ;;  %v2338_v0 = vadd.s32 %v2337_v26, %v2335_v50 }
 0x628   :  { %v2377_v12 = vcvt.f32.s32 %v2376_v18 }
 0x629   :  { %2448 = vst [vmem:[%s4772_s8 + $0xc8] sm:$0xff] %v2338_v0  ;;  %v2390_v39 = vpop.xlane.xlu1 %2389 }
 0x62a   :  { %v2380_v44 = vadd.s32 %v2379_v31, %v2377_v12  ;;  %v2391_v24 = vcvt.f32.s32 %v2390_v39 }
 0x62b   :  { %v2404_v60 = vpop.xlane.xlu0 %2403 }
 0x62c   :  { %2451 = vst [vmem:[%s4772_s8 + $0xe0] sm:$0xff] %v2380_v44  ;;  %v2405_v11 = vcvt.f32.s32 %v2404_v60  ;;  %v2394_v49 = vadd.s32 %v2393_v33, %v2391_v24 }
 0x62d   :  { %v2418_v41 = vpop.xlane.xlu1 %2417 }
 0x62e   :  { %v2408_v34 = vadd.s32 %v2407_v21, %v2405_v11  ;;  %2452 = vst [vmem:[%s4772_s8 + $0xe8] sm:$0xff] %v2394_v49  ;;  %v2419_v7 = vcvt.f32.s32 %v2418_v41 }
 0x630   :  { %2453 = vst [vmem:[%s4772_s8 + $0xf0] sm:$0xff] %v2408_v34  ;;  %v2422_v46 = vadd.s32 %v2421_v25, %v2419_v7 }
 0x632   :  { %2454 = vst [vmem:[%s4772_s8 + $0xf8] sm:$0xff] %v2422_v46 }

</bundles_post_ra>
